<compile_context>
chip_gen: v6e
topology: v6e:2x2x1
jax: 0.10.0
libtpu: 0.0.40
codegen_flags: <defaults>
</compile_context>

<pallas_src>
import math
from functools import partial

import jax
import jax.numpy as jnp
from jax.experimental import pallas as pl
from jax.experimental.pallas import tpu as pltpu

LN_EPS = 1e-5


def _layernorm(x, gamma, beta):
    # matches custom LayerNorm: biased variance, eps=1e-5, scale & shift (all f32)
    mean = jnp.mean(x, axis=-1, keepdims=True)
    var = jnp.mean((x - mean) ** 2, axis=-1, keepdims=True)
    return (x - mean) * jax.lax.rsqrt(var + LN_EPS) * gamma + beta


def _gelu_tanh(x):
    # GELU tanh approximation (as in the custom GELU module), f32
    c = math.sqrt(2.0 / math.pi)
    return 0.5 * x * (1.0 + jnp.tanh(c * (x + 0.044715 * x * x * x)))


def make_transformer_block_kernel(batch, seq, num_heads):
    def kernel(x_ref, wqkv_ref, wo_ref, bo_ref,
               g1_ref, s1_ref, g2_ref, s2_ref,
               w1_ref, b1_ref, w2_ref, b2_ref, o_ref):
        bf16 = jnp.bfloat16
        R, E = x_ref.shape                 # R = B*S rows
        hd = E // num_heads
        C = num_heads * batch              # combined (head, batch) dim

        x = x_ref[...]                     # (R, E) f32

        # ---- LayerNorm 1 (f32 statistics) ----
        xn = _layernorm(x, g1_ref[...], s1_ref[...])

        # ---- Fused QKV projection: one (R,E)@(E,3E) matmul ----
        # 1/sqrt(hd) is pre-folded into the Q columns of wqkv at pack time.
        qkv = jnp.dot(xn.astype(bf16), wqkv_ref[...],
                      preferred_element_type=jnp.float32)        # (R, 3E) f32
        q = qkv[:, 0:E]
        k = qkv[:, E:2 * E]
        v = qkv[:, 2 * E:3 * E]

        def split_heads(t):                # (R, E) f32 -> (NH*B, S, hd) f32
            t = t.reshape(R, num_heads, hd)
            t = jnp.transpose(t, (1, 0, 2))        # minor dim unchanged
            return t.reshape(C, seq, hd)

        qh = split_heads(q).astype(bf16)
        kh = split_heads(k).astype(bf16)
        vh = split_heads(v).astype(bf16)

        # ---- Causal attention, head-batched over C = NH*B ----
        s = jnp.einsum("cqd,ckd->cqk", qh, kh,
                       preferred_element_type=jnp.float32)        # (C, S, S)
        rows = jax.lax.broadcasted_iota(jnp.int32, (seq, seq), 0)
        cols = jax.lax.broadcasted_iota(jnp.int32, (seq, seq), 1)
        causal = (rows >= cols)[None]                             # (1, S, S)
        # -inf is safe here: the diagonal is always unmasked so every row has a finite max.
        s = jnp.where(causal, s, -jnp.inf)
        s = s - jnp.max(s, axis=-1, keepdims=True)
        p = jnp.exp(s)
        p = p * pl.reciprocal(jnp.sum(p, axis=-1, keepdims=True), approx=True)
        # TODO(synk): attention-weight dropout omitted (dropout=0.0 / inference).

        ctx = jnp.einsum("cqk,ckd->cqd", p.astype(bf16), vh,
                         preferred_element_type=jnp.float32)      # (C, S, hd) f32

        # ---- Merge heads (one relayout) + single (R,E)@(E,E) output projection ----
        ctx = ctx.reshape(num_heads, R, hd)
        ctx = jnp.transpose(ctx, (1, 0, 2)).reshape(R, E)
        attn_out = jnp.dot(ctx.astype(bf16), wo_ref[...],
                           preferred_element_type=jnp.float32) + bo_ref[...]

        # drop_shortcut is identity (p = 0.0); residual add in f32
        x1 = x + attn_out

        # ---- LayerNorm 2 + FeedForward (batch folded into rows, single matmuls) ----
        x2n = _layernorm(x1, g2_ref[...], s2_ref[...]).astype(bf16)
        h1 = jnp.dot(x2n, w1_ref[...],
                     preferred_element_type=jnp.float32) + b1_ref[...]   # (R, H)
        h1 = _gelu_tanh(h1)
        ff = jnp.dot(h1.astype(bf16), w2_ref[...],
                     preferred_element_type=jnp.float32) + b2_ref[...]   # (R, E)

        o_ref[...] = (x1 + ff).astype(o_ref.dtype)
    return kernel


def pack_params(params, num_heads):
    """One-time, wrapper-side weight packing (hoisted out of the per-call path)."""
    E = params["wq"].shape[0]
    hd = E // num_heads
    scale = 1.0 / math.sqrt(hd)
    bf16 = jnp.bfloat16
    # Fused QKV weight (E, 3E); attention scale folded into the Q block.
    wqkv = jnp.concatenate(
        [params["wq"] * scale, params["wk"], params["wv"]], axis=-1).astype(bf16)
    return {
        "wqkv": wqkv,
        "wo": params["wo"].astype(bf16),
        "bo": params["bo"],
        "g1": params["g1"], "s1": params["s1"],
        "g2": params["g2"], "s2": params["s2"],
        "w1": params["w1"].astype(bf16),
        "b1": params["b1"],
        "w2": params["w2"].astype(bf16),
        "b2": params["b2"],
    }


@partial(jax.jit, static_argnames=("num_heads",))
def transformer_block(x, packed, num_heads):
    B, S, E = x.shape
    # Fold batch into rows wrapper-side (leading-dim only reshape, layout-preserving);
    # the kernel sees / stores a lane+sublane-dense (B*S, E) slab.
    x_flat = x.reshape(B * S, E)
    out_flat = pl.pallas_call(
        make_transformer_block_kernel(B, S, num_heads),
        out_shape=jax.ShapeDtypeStruct((B * S, E), x.dtype),
        compiler_params=pltpu.CompilerParams(vmem_limit_bytes=32 * 1024 * 1024),
    )(x_flat, packed["wqkv"], packed["wo"], packed["bo"],
      packed["g1"], packed["s1"], packed["g2"], packed["s2"],
      packed["w1"], packed["b1"], packed["w2"], packed["b2"])
    return out_flat.reshape(B, S, E)


def reference_transformer_block(x, p, num_heads):
    """Pure-JAX f32 reference mirroring the PyTorch forward (dropout=0, eval)."""
    B, S, E = x.shape
    hd = E // num_heads

    def ln(z, g, b):
        m = jnp.mean(z, axis=-1, keepdims=True)
        v = jnp.mean((z - m) ** 2, axis=-1, keepdims=True)
        return (z - m) / jnp.sqrt(v + LN_EPS) * g + b

    xn = ln(x, p["g1"], p["s1"])
    q = xn @ p["wq"]
    k = xn @ p["wk"]
    v = xn @ p["wv"]
    q = q.reshape(B, S, num_heads, hd).transpose(0, 2, 1, 3)
    k = k.reshape(B, S, num_heads, hd).transpose(0, 2, 1, 3)
    v = v.reshape(B, S, num_heads, hd).transpose(0, 2, 1, 3)
    s = jnp.einsum("bhqd,bhkd->bhqk", q, k) / math.sqrt(hd)
    mask = jnp.tril(jnp.ones((S, S), bool))
    s = jnp.where(mask, s, -jnp.inf)
    a = jax.nn.softmax(s, axis=-1)
    ctx = jnp.einsum("bhqk,bhkd->bhqd", a, v).transpose(0, 2, 1, 3).reshape(B, S, E)
    attn_out = ctx @ p["wo"] + p["bo"]
    x1 = x + attn_out
    x2n = ln(x1, p["g2"], p["s2"])
    c = math.sqrt(2.0 / math.pi)
    h1 = x2n @ p["w1"] + p["b1"]
    h1 = 0.5 * h1 * (1.0 + jnp.tanh(c * (h1 + 0.044715 * h1 ** 3)))
    ff = h1 @ p["w2"] + p["b2"]
    return x1 + ff


if __name__ == "__main__":
    # cfg: emb_dim=32, n_heads=4, context_length=8, dropout=0.0, qkv_bias=False
    B, S, E, NH = 2, 8, 32, 4
    H = 4 * E

    key = jax.random.PRNGKey(0)
    ks = jax.random.split(key, 10)

    def init(k, shape, scale=0.02):
        return (scale * jax.random.normal(k, shape)).astype(jnp.float32)

    params = {
        "wq": init(ks[0], (E, E)),
        "wk": init(ks[1], (E, E)),
        "wv": init(ks[2], (E, E)),
        "wo": init(ks[3], (E, E)),
        "bo": init(ks[4], (1, E)),
        "g1": jnp.ones((1, E), jnp.float32),
        "s1": jnp.zeros((1, E), jnp.float32),
        "g2": jnp.ones((1, E), jnp.float32),
        "s2": jnp.zeros((1, E), jnp.float32),
        "w1": init(ks[5], (E, H)),
        "b1": init(ks[6], (1, H)),
        "w2": init(ks[7], (H, E)),
        "b2": init(ks[8], (1, E)),
    }
    x = jax.random.normal(ks[9], (B, S, E), jnp.float32)

    packed = pack_params(params, NH)          # one-time packing, outside the hot path
    out = transformer_block(x, packed, NH)
    out = jax.block_until_ready(out)

    ref = reference_transformer_block(x, params, NH)
    assert out.shape == (B, S, E)
    # bf16 MXU inputs + approx reciprocal -> loosened tolerance vs f32 reference
    assert jnp.allclose(out, ref, atol=2e-2, rtol=2e-2), "mismatch vs reference"

    print("KERNEL_OK")
</pallas_src>

<mosaic_0001>
module attributes {stable_mosaic.version = 11 : i64} {
  func.func @kernel(%arg0: memref<16x32xf32, #tpu.memory_space<vmem>>, %arg1: memref<32x96xbf16, #tpu.memory_space<vmem>>, %arg2: memref<32x32xbf16, #tpu.memory_space<vmem>>, %arg3: memref<1x32xf32, #tpu.memory_space<vmem>>, %arg4: memref<1x32xf32, #tpu.memory_space<vmem>>, %arg5: memref<1x32xf32, #tpu.memory_space<vmem>>, %arg6: memref<1x32xf32, #tpu.memory_space<vmem>>, %arg7: memref<1x32xf32, #tpu.memory_space<vmem>>, %arg8: memref<32x128xbf16, #tpu.memory_space<vmem>>, %arg9: memref<1x128xf32, #tpu.memory_space<vmem>>, %arg10: memref<128x32xbf16, #tpu.memory_space<vmem>>, %arg11: memref<1x32xf32, #tpu.memory_space<vmem>>, %arg12: memref<16x32xf32, #tpu.memory_space<vmem>>) attributes {dimension_semantics = [], scalar_prefetch = 0 : i64, scratch_operands = 0 : i64, tpu.core_type = #tpu.core_type<tc>} {
    %c0 = arith.constant 0 : index
    %c0_0 = arith.constant 0 : index
    %0 = vector.load %arg0[%c0, %c0_0] : memref<16x32xf32, #tpu.memory_space<vmem>>, vector<16x32xf32>
    %c0_1 = arith.constant 0 : index
    %c0_2 = arith.constant 0 : index
    %1 = vector.load %arg4[%c0_1, %c0_2] : memref<1x32xf32, #tpu.memory_space<vmem>>, vector<1x32xf32>
    %c0_3 = arith.constant 0 : index
    %c0_4 = arith.constant 0 : index
    %2 = vector.load %arg5[%c0_3, %c0_4] : memref<1x32xf32, #tpu.memory_space<vmem>>, vector<1x32xf32>
    %cst = arith.constant dense<0.000000e+00> : vector<16xf32>
    %3 = vector.multi_reduction <add>, %0, %cst [1] : vector<16x32xf32> to vector<16xf32>
    %4 = vector.shape_cast %3 : vector<16xf32> to vector<16x1xf32>
    %cst_5 = arith.constant 3.200000e+01 : f32
    %5 = vector.broadcast %cst_5 : f32 to vector<16x1xf32>
    %6 = arith.divf %4, %5 : vector<16x1xf32>
    %7 = vector.broadcast %6 : vector<16x1xf32> to vector<16x32xf32>
    %8 = arith.subf %0, %7 : vector<16x32xf32>
    %9 = arith.mulf %8, %8 : vector<16x32xf32>
    %cst_6 = arith.constant dense<0.000000e+00> : vector<16xf32>
    %10 = vector.multi_reduction <add>, %9, %cst_6 [1] : vector<16x32xf32> to vector<16xf32>
    %11 = vector.shape_cast %10 : vector<16xf32> to vector<16x1xf32>
    %cst_7 = arith.constant 3.200000e+01 : f32
    %12 = vector.broadcast %cst_7 : f32 to vector<16x1xf32>
    %13 = arith.divf %11, %12 : vector<16x1xf32>
    %14 = vector.broadcast %6 : vector<16x1xf32> to vector<16x32xf32>
    %15 = arith.subf %0, %14 : vector<16x32xf32>
    %cst_8 = arith.constant 9.99999974E-6 : f32
    %16 = vector.broadcast %cst_8 : f32 to vector<16x1xf32>
    %17 = arith.addf %13, %16 : vector<16x1xf32>
    %18 = math.rsqrt %17 : vector<16x1xf32>
    %19 = vector.broadcast %18 : vector<16x1xf32> to vector<16x32xf32>
    %20 = arith.mulf %15, %19 : vector<16x32xf32>
    %21 = vector.broadcast %1 : vector<1x32xf32> to vector<16x32xf32>
    %22 = arith.mulf %20, %21 : vector<16x32xf32>
    %23 = vector.broadcast %2 : vector<1x32xf32> to vector<16x32xf32>
    %24 = arith.addf %22, %23 : vector<16x32xf32>
    %25 = arith.truncf %24 : vector<16x32xf32> to vector<16x32xbf16>
    %c0_9 = arith.constant 0 : index
    %c0_10 = arith.constant 0 : index
    %26 = vector.load %arg1[%c0_9, %c0_10] : memref<32x96xbf16, #tpu.memory_space<vmem>>, vector<32x96xbf16>
    %cst_11 = arith.constant dense<0.000000e+00> : vector<16x96xf32>
    %27 = tpu.matmul %25, %26, %cst_11 {dimension_numbers = #tpu.dot_dimension_numbers<[1], [0], [0], [1], [0, 0, 1, 1], [], []>} : vector<16x32xbf16>, vector<32x96xbf16>, vector<16x96xf32> -> vector<16x96xf32>
    %28 = vector.extract_strided_slice %27 {offsets = [0, 0], sizes = [16, 32], strides = [1, 1]} : vector<16x96xf32> to vector<16x32xf32>
    %29 = vector.extract_strided_slice %27 {offsets = [0, 32], sizes = [16, 32], strides = [1, 1]} : vector<16x96xf32> to vector<16x32xf32>
    %30 = vector.extract_strided_slice %27 {offsets = [0, 64], sizes = [16, 32], strides = [1, 1]} : vector<16x96xf32> to vector<16x32xf32>
    %31 = vector.shape_cast %28 : vector<16x32xf32> to vector<16x4x8xf32>
    %32 = tpu.transpose %31, [1, 0, 2] : vector<16x4x8xf32> -> vector<4x16x8xf32>
    %33 = vector.shape_cast %32 : vector<4x16x8xf32> to vector<8x8x8xf32>
    %34 = arith.truncf %33 : vector<8x8x8xf32> to vector<8x8x8xbf16>
    %35 = vector.shape_cast %29 : vector<16x32xf32> to vector<16x4x8xf32>
    %36 = tpu.transpose %35, [1, 0, 2] : vector<16x4x8xf32> -> vector<4x16x8xf32>
    %37 = vector.shape_cast %36 : vector<4x16x8xf32> to vector<8x8x8xf32>
    %38 = arith.truncf %37 : vector<8x8x8xf32> to vector<8x8x8xbf16>
    %39 = vector.shape_cast %30 : vector<16x32xf32> to vector<16x4x8xf32>
    %40 = tpu.transpose %39, [1, 0, 2] : vector<16x4x8xf32> -> vector<4x16x8xf32>
    %41 = vector.shape_cast %40 : vector<4x16x8xf32> to vector<8x8x8xf32>
    %42 = arith.truncf %41 : vector<8x8x8xf32> to vector<8x8x8xbf16>
    "tpu.trace_start"() <{level = 10 : i32, message = "cqd,ckd->cqk"}> : () -> ()
    %cst_12 = arith.constant dense<0.000000e+00> : vector<8x8x8xf32>
    %43 = tpu.matmul %34, %38, %cst_12 {dimension_numbers = #tpu.dot_dimension_numbers<[2], [2], [1], [1], [0, 0, 0, 1, 1, 1], [0], [0]>} : vector<8x8x8xbf16>, vector<8x8x8xbf16>, vector<8x8x8xf32> -> vector<8x8x8xf32>
    "tpu.trace_stop"() : () -> ()
    %44 = tpu.iota {dimensions = array<i32: 0>} : vector<8x8xi32>
    %45 = tpu.iota {dimensions = array<i32: 1>} : vector<8x8xi32>
    %46 = arith.cmpi sge, %44, %45 : vector<8x8xi32>
    %47 = vector.shape_cast %46 : vector<8x8xi1> to vector<1x8x8xi1>
    %cst_13 = arith.constant 0xFF800000 : f32
    %48 = vector.shape_cast %47 : vector<1x8x8xi1> to vector<1x8x8xi1>
    %49 = vector.broadcast %48 : vector<1x8x8xi1> to vector<8x8x8xi1>
    %50 = vector.broadcast %cst_13 : f32 to vector<8x8x8xf32>
    %51 = arith.select %49, %43, %50 : vector<8x8x8xi1>, vector<8x8x8xf32>
    %cst_14 = arith.constant dense<0xFF800000> : vector<8x8xf32>
    %52 = vector.multi_reduction <maximumf>, %51, %cst_14 [2] : vector<8x8x8xf32> to vector<8x8xf32>
    %53 = vector.shape_cast %52 : vector<8x8xf32> to vector<8x8x1xf32>
    %54 = vector.broadcast %53 : vector<8x8x1xf32> to vector<8x8x8xf32>
    %55 = arith.subf %51, %54 : vector<8x8x8xf32>
    %56 = math.exp %55 : vector<8x8x8xf32>
    %cst_15 = arith.constant dense<0.000000e+00> : vector<8x8xf32>
    %57 = vector.multi_reduction <add>, %56, %cst_15 [2] : vector<8x8x8xf32> to vector<8x8xf32>
    %58 = vector.shape_cast %57 : vector<8x8xf32> to vector<8x8x1xf32>
    %59 = tpu.reciprocal %58 {approx = true} : vector<8x8x1xf32> -> vector<8x8x1xf32>
    %60 = vector.broadcast %59 : vector<8x8x1xf32> to vector<8x8x8xf32>
    %61 = arith.mulf %56, %60 : vector<8x8x8xf32>
    %62 = arith.truncf %61 : vector<8x8x8xf32> to vector<8x8x8xbf16>
    "tpu.trace_start"() <{level = 10 : i32, message = "cqk,ckd->cqd"}> : () -> ()
    %cst_16 = arith.constant dense<0.000000e+00> : vector<8x8x8xf32>
    %63 = tpu.matmul %62, %42, %cst_16 {dimension_numbers = #tpu.dot_dimension_numbers<[2], [1], [1], [2], [0, 0, 0, 1, 1, 2], [0], [0]>} : vector<8x8x8xbf16>, vector<8x8x8xbf16>, vector<8x8x8xf32> -> vector<8x8x8xf32>
    "tpu.trace_stop"() : () -> ()
    %64 = vector.shape_cast %63 : vector<8x8x8xf32> to vector<4x16x8xf32>
    %65 = tpu.transpose %64, [1, 0, 2] : vector<4x16x8xf32> -> vector<16x4x8xf32>
    %66 = vector.shape_cast %65 : vector<16x4x8xf32> to vector<16x32xf32>
    %67 = arith.truncf %66 : vector<16x32xf32> to vector<16x32xbf16>
    %c0_17 = arith.constant 0 : index
    %c0_18 = arith.constant 0 : index
    %68 = vector.load %arg2[%c0_17, %c0_18] : memref<32x32xbf16, #tpu.memory_space<vmem>>, vector<32x32xbf16>
    %cst_19 = arith.constant dense<0.000000e+00> : vector<16x32xf32>
    %69 = tpu.matmul %67, %68, %cst_19 {dimension_numbers = #tpu.dot_dimension_numbers<[1], [0], [0], [1], [0, 0, 1, 1], [], []>} : vector<16x32xbf16>, vector<32x32xbf16>, vector<16x32xf32> -> vector<16x32xf32>
    %c0_20 = arith.constant 0 : index
    %c0_21 = arith.constant 0 : index
    %70 = vector.load %arg3[%c0_20, %c0_21] : memref<1x32xf32, #tpu.memory_space<vmem>>, vector<1x32xf32>
    %71 = vector.broadcast %70 : vector<1x32xf32> to vector<16x32xf32>
    %72 = arith.addf %69, %71 : vector<16x32xf32>
    %73 = arith.addf %0, %72 : vector<16x32xf32>
    %c0_22 = arith.constant 0 : index
    %c0_23 = arith.constant 0 : index
    %74 = vector.load %arg6[%c0_22, %c0_23] : memref<1x32xf32, #tpu.memory_space<vmem>>, vector<1x32xf32>
    %c0_24 = arith.constant 0 : index
    %c0_25 = arith.constant 0 : index
    %75 = vector.load %arg7[%c0_24, %c0_25] : memref<1x32xf32, #tpu.memory_space<vmem>>, vector<1x32xf32>
    %cst_26 = arith.constant dense<0.000000e+00> : vector<16xf32>
    %76 = vector.multi_reduction <add>, %73, %cst_26 [1] : vector<16x32xf32> to vector<16xf32>
    %77 = vector.shape_cast %76 : vector<16xf32> to vector<16x1xf32>
    %cst_27 = arith.constant 3.200000e+01 : f32
    %78 = vector.broadcast %cst_27 : f32 to vector<16x1xf32>
    %79 = arith.divf %77, %78 : vector<16x1xf32>
    %80 = vector.broadcast %79 : vector<16x1xf32> to vector<16x32xf32>
    %81 = arith.subf %73, %80 : vector<16x32xf32>
    %82 = arith.mulf %81, %81 : vector<16x32xf32>
    %cst_28 = arith.constant dense<0.000000e+00> : vector<16xf32>
    %83 = vector.multi_reduction <add>, %82, %cst_28 [1] : vector<16x32xf32> to vector<16xf32>
    %84 = vector.shape_cast %83 : vector<16xf32> to vector<16x1xf32>
    %cst_29 = arith.constant 3.200000e+01 : f32
    %85 = vector.broadcast %cst_29 : f32 to vector<16x1xf32>
    %86 = arith.divf %84, %85 : vector<16x1xf32>
    %87 = vector.broadcast %79 : vector<16x1xf32> to vector<16x32xf32>
    %88 = arith.subf %73, %87 : vector<16x32xf32>
    %cst_30 = arith.constant 9.99999974E-6 : f32
    %89 = vector.broadcast %cst_30 : f32 to vector<16x1xf32>
    %90 = arith.addf %86, %89 : vector<16x1xf32>
    %91 = math.rsqrt %90 : vector<16x1xf32>
    %92 = vector.broadcast %91 : vector<16x1xf32> to vector<16x32xf32>
    %93 = arith.mulf %88, %92 : vector<16x32xf32>
    %94 = vector.broadcast %74 : vector<1x32xf32> to vector<16x32xf32>
    %95 = arith.mulf %93, %94 : vector<16x32xf32>
    %96 = vector.broadcast %75 : vector<1x32xf32> to vector<16x32xf32>
    %97 = arith.addf %95, %96 : vector<16x32xf32>
    %98 = arith.truncf %97 : vector<16x32xf32> to vector<16x32xbf16>
    %c0_31 = arith.constant 0 : index
    %c0_32 = arith.constant 0 : index
    %99 = vector.load %arg8[%c0_31, %c0_32] : memref<32x128xbf16, #tpu.memory_space<vmem>>, vector<32x128xbf16>
    %cst_33 = arith.constant dense<0.000000e+00> : vector<16x128xf32>
    %100 = tpu.matmul %98, %99, %cst_33 {dimension_numbers = #tpu.dot_dimension_numbers<[1], [0], [0], [1], [0, 0, 1, 1], [], []>} : vector<16x32xbf16>, vector<32x128xbf16>, vector<16x128xf32> -> vector<16x128xf32>
    %c0_34 = arith.constant 0 : index
    %c0_35 = arith.constant 0 : index
    %101 = vector.load %arg9[%c0_34, %c0_35] : memref<1x128xf32, #tpu.memory_space<vmem>>, vector<1x128xf32>
    %102 = vector.broadcast %101 : vector<1x128xf32> to vector<16x128xf32>
    %103 = arith.addf %100, %102 : vector<16x128xf32>
    %cst_36 = arith.constant 5.000000e-01 : f32
    %104 = vector.broadcast %cst_36 : f32 to vector<16x128xf32>
    %105 = arith.mulf %104, %103 : vector<16x128xf32>
    %cst_37 = arith.constant 4.471500e-02 : f32
    %106 = vector.broadcast %cst_37 : f32 to vector<16x128xf32>
    %107 = arith.mulf %106, %103 : vector<16x128xf32>
    %108 = arith.mulf %107, %103 : vector<16x128xf32>
    %109 = arith.mulf %108, %103 : vector<16x128xf32>
    %110 = arith.addf %103, %109 : vector<16x128xf32>
    %cst_38 = arith.constant 0.797884583 : f32
    %111 = vector.broadcast %cst_38 : f32 to vector<16x128xf32>
    %112 = arith.mulf %111, %110 : vector<16x128xf32>
    %113 = math.tanh %112 : vector<16x128xf32>
    %cst_39 = arith.constant 1.000000e+00 : f32
    %114 = vector.broadcast %cst_39 : f32 to vector<16x128xf32>
    %115 = arith.addf %114, %113 : vector<16x128xf32>
    %116 = arith.mulf %105, %115 : vector<16x128xf32>
    %117 = arith.truncf %116 : vector<16x128xf32> to vector<16x128xbf16>
    %c0_40 = arith.constant 0 : index
    %c0_41 = arith.constant 0 : index
    %118 = vector.load %arg10[%c0_40, %c0_41] : memref<128x32xbf16, #tpu.memory_space<vmem>>, vector<128x32xbf16>
    %cst_42 = arith.constant dense<0.000000e+00> : vector<16x32xf32>
    %119 = tpu.matmul %117, %118, %cst_42 {dimension_numbers = #tpu.dot_dimension_numbers<[1], [0], [0], [1], [0, 0, 1, 1], [], []>} : vector<16x128xbf16>, vector<128x32xbf16>, vector<16x32xf32> -> vector<16x32xf32>
    %c0_43 = arith.constant 0 : index
    %c0_44 = arith.constant 0 : index
    %120 = vector.load %arg11[%c0_43, %c0_44] : memref<1x32xf32, #tpu.memory_space<vmem>>, vector<1x32xf32>
    %121 = vector.broadcast %120 : vector<1x32xf32> to vector<16x32xf32>
    %122 = arith.addf %119, %121 : vector<16x32xf32>
    %123 = arith.addf %73, %122 : vector<16x32xf32>
    %c0_45 = arith.constant 0 : index
    %c0_46 = arith.constant 0 : index
    %124 = vector.load %arg12[%c0_45, %c0_46] : memref<16x32xf32, #tpu.memory_space<vmem>>, vector<16x32xf32>
    tpu.vector_store %arg12[%c0_45, %c0_46], %123 {strides = array<i32>} : memref<16x32xf32, #tpu.memory_space<vmem>>, vector<16x32xf32>,
    return
  }
}

</mosaic_0001>

<bundles_post_ra>
// kernel: transformer_block.1
= control target key start
LH: loop header
LB: loop body
LE: loop exit
PB: predicated region body
PF: predicated region fallthrough
CT: control target
= control target key end

     0   :  { %vm47_vm0 = vcmask 261120   ;;  %s3521_s0 = inlined_call_operand.vmem [shape: f32[16,32], index: 0, kind: input, shape index: {}]   ;;  %s3522_s1 = inlined_call_operand.vmem [shape: bf16[32,96], index: 1, kind: input, shape index: {}]   ;;  %s3523_s2 = inlined_call_operand.vmem [shape: bf16[32,32], index: 2, kind: input, shape index: {}]   ;;  %s3524_s3 = inlined_call_operand.vmem [shape: f32[1,32], index: 3, kind: input, shape index: {}]   ;;  %s3525_s4 = inlined_call_operand.vmem [shape: f32[1,32], index: 4, kind: input, shape index: {}]   ;;  %s3526_s5 = inlined_call_operand.vmem [shape: f32[1,32], index: 5, kind: input, shape index: {}]   ;;  %s3527_s6 = inlined_call_operand.vmem [shape: f32[1,32], index: 6, kind: input, shape index: {}]   ;;  %s3528_s7 = inlined_call_operand.vmem [shape: f32[1,32], index: 7, kind: input, shape index: {}]   ;;  %s3529_s8 = inlined_call_operand.vmem [shape: bf16[32,128], index: 8, kind: input, shape index: {}]   ;;  %s3530_s9 = inlined_call_operand.vmem [shape: f32[1,128], index: 9, kind: input, shape index: {}]   ;;  %s3531_s10 = inlined_call_operand.vmem [shape: bf16[128,32], index: 10, kind: input, shape index: {}]   ;;  %s3532_s11 = inlined_call_operand.vmem [shape: f32[1,32], index: 11, kind: input, shape index: {}]   ;;  %s3533_s12 = inlined_call_operand.hbm [shape: f32[16,32], index: 12, kind: output, shape index: {}]  }
   0x1   :  { %v43_v0 = vld [vmem:[%s3521_s0] sm:$0xff]  ;;  %v44_v1 = vld [vmem:[%s3521_s0 + $0x8] sm:$0xff] }
   0x2   :  { %v48_v2 = vsel %vm47_vm0, %v43_v0, 0.0  ;;  %v51_v3 = vsel %vm47_vm0, %v44_v1, 0.0 }
   0x3   :  { %49 = vadd.xlane.f32.xlu0 %v48_v2 }
   0x7   :  { %52 = vadd.xlane.f32.xlu0 %v51_v3 }
   0x8   :  { %17 = vsyncpa [#allocation3], 0  ;;  %v2821_v14 = vld [vmem:[%s3522_s1 + $0x8] sm:$0xff]   ;;  %v2903_v15 = vmov 0.0   ;;  %vm2904_vm1 = vmmov 0   ;;  %v2822_v16 = vld [vmem:[%s3522_s1] sm:$0xff]   ;;  %v177_v46 = vlaneseq }
   0x9   :  { %2652 = vmatprep.subr.bf16.mxu0 %v2903_v15  ;;  %2656 = vmatprep.mubr.msk.bf16.mxu0 %vm2904_vm1, %v2903_v15  ;;  %v2546_v25 = vld [vmem:[%s3525_s4] ss:$0 sm:$0xff]  ;;  %s2905_s14 = smov 112   ;;  %s2906_s4 = smov 120   ;;  %v2910_v44 = vmov 1983009808  }
   0xa   :  { %2653 = vmatpush3.bf16.msra.mxu0 %v2821_v14  ;;  %2672 = vmatprep.subr.bf16.mxu1 %v2903_v15  ;;  %v2547_v29 = vld [vmem:[%s3526_s5] ss:$0 sm:$0xff]  ;;  %s2907_s15 = smov 104   ;;  %s2908_s5 = smov 96   ;;  %v175_v45 = vunpack.c.l.s4 %v2910_v44  ;;  %v3039_v48 = vshrl.u32 %v177_v46, 7  ;;  %vm1060_vm2 = vcmask 64512  }
   0xb   :  { %2654 = vmatprep.subr.bf16.mxu0 %v2903_v15  ;;  %2674 = vmatprep.mubr.msk.bf16.mxu1 %vm2904_vm1, %v2903_v15  ;;  %s2909_s16 = smov 64   ;;  %v2911_v49 = vmov 1934713408   ;;  %vm1543_vm4 = vcmask 1043456   ;;  %s2912_s21 = smov 16   ;;  %vm2207_vm5 = vcmask 130048  }
   0xc   :  { %v176_v47 = vunpack.c.0.s8 %v175_v45  ;;  %v207_v50 = vunpack.c.l.s4 %v2911_v49  ;;  %s2913_s22 = smov 8   ;;  %s2914_s23 = smov 24   ;;  %vm2210_vm6 = vcmask 195584  }
   0xe   :  { %2655 = vmatpush3.bf16.msra.mxu0 %v2822_v16  ;;  %v3044_v53 = vsub.s32 %v176_v47, %v3039_v48  ;;  %v208_v56 = vunpack.c.0.s8 %v207_v50 }
   0xf   :  { %2660 = vmatprep.subr.bf16.mxu0 %v2903_v15 }
  0x10   :  { %v3053_v61 = vsub.s32 %v208_v56, %v3039_v48 }
  0x8c   :  { %v50_v4 = vpop.xlane.xlu0 %49 }
  0x8d   :  { %v55_v5 = vmul.f32 0.03125, %v50_v4 }
  0x8f   :  { %v57_v6 = vsub.f32 %v43_v0, %v55_v5 }
  0x90   :  { %v53_v7 = vpop.xlane.xlu0 %52 }
  0x91   :  { %v56_v8 = vmul.f32 0.03125, %v53_v7  ;;  %v59_v9 = vmul.f32 %v57_v6, %v57_v6 }
  0x93   :  { %v58_v10 = vsub.f32 %v44_v1, %v56_v8  ;;  %v61_v11 = vsel %vm47_vm0, %v59_v9, 0.0 }
  0x94   :  { %62 = vadd.xlane.f32.xlu1 %v61_v11 }
  0x95   :  { %v60_v12 = vmul.f32 %v58_v10, %v58_v10 }
  0x97   :  { %v64_v13 = vsel %vm47_vm0, %v60_v12, 0.0 }
  0x98   :  { %65 = vadd.xlane.f32.xlu1 %v64_v13 }
 0x11d   :  { %v63_v17 = vpop.xlane.xlu1 %62 }
 0x11e   :  { %v67_v18 = vmul.f32 0.03125, %v63_v17 }
 0x120   :  { %v69_v19 = vadd.f32 1e-05, %v67_v18 }
 0x121   :  { %v66_v20 = vpop.xlane.xlu1 %65 }
 0x122   :  { %2835 = vrsqrt.f32 %v69_v19  ;;  %v68_v21 = vmul.f32 0.03125, %v66_v20 }
 0x124   :  { %v70_v22 = vadd.f32 1e-05, %v68_v21 }
 0x126   :  { %2837 = vrsqrt.f32 %v70_v22 }
 0x12f   :  { %v2836_v23 = vpop.eup %2835 }
 0x130   :  { %v73_v24 = vmul.f32 %v2836_v23, %v57_v6 }
 0x132   :  { %v81_v28 = vmul.f32 %v2546_v25, %v73_v24 }
 0x133   :  { %v2838_v26 = vpop.eup %2837 }
 0x134   :  { %v74_v27 = vmul.f32 %v2838_v26, %v58_v10  ;;  %v89_v31 = vadd.f32 %v2547_v29, %v81_v28 }
 0x136   :  { %v82_v30 = vmul.f32 %v2546_v25, %v74_v27 }
 0x138   :  { %v90_v32 = vadd.f32 %v2547_v29, %v82_v30 }
 0x13a   :  { %v91_v33 = vpack.c.bf16 %v90_v32, %v89_v31 }
 0x13c   :  { %2657 = vmatmul.mubr.msk.bf16.vlgmr.msra.gmra.mxu0 %vm47_vm0, %v91_v33 }
 0x13d   :  { %2662 = vmatprep.mubr.msk.bf16.mxu0 %vm2904_vm1, %v2903_v15 }
 0x1fc   :  { %v145_v34 = vpop.f32.mrf.mxu0 }
 0x1fd   :  { %160 = vrot.lane.b32.xlu1 %v145_v34, %s2905_s14  ;;  %154 = vrot.lane.b32.xlu0 %v145_v34, %s2906_s4 }
 0x1fe   :  { %v2658_v35 = vpop.f32.mrf.mxu0 }
 0x200   :  { %v3015_v36 = vpop.f32.mrf.mxu0 }
 0x201   :  { %166 = vrot.lane.b32.xlu1 %v145_v34, %s2907_s15  ;;  %162 = vrot.lane.b32.xlu0 %v3015_v36, %s2905_s14 }
 0x202   :  { %v2659_v37 = vpop.f32.mrf.mxu0 }
 0x205   :  { %452 = vrot.lane.b32.xlu0 %v145_v34, %s2908_s5  ;;  %156 = vrot.lane.b32.xlu1 %v3015_v36, %s2906_s4 }
 0x209   :  { %168 = vrot.lane.b32.xlu1 %v3015_v36, %s2907_s15 }
 0x26f   :  { %v3020_v38 = vpop.permute.xlu1 %160  ;;  %v155_v39 = vpop.permute.xlu0 %154 }
 0x270   :  { %460 = vrot.lane.b32.xlu0 %v3020_v38, %s2908_s5  ;;  %456 = vrot.lane.b32.xlu1 %v155_v39, %s2908_s5  ;;  %v172_v54 = vcombine.low %v145_v34, %v3020_v38  ;;  %v173_v55 = vcombine.high %v145_v34, %v3020_v38 }
 0x272   :  { %v180_v59 = vrot.slane %v172_v54, %v3044_v53  ;;  %v187_v60 = vrot.slane %v173_v55, %v3044_v53 }
 0x273   :  { %v3023_v40 = vpop.permute.xlu1 %166  ;;  %v3027_v41 = vpop.permute.xlu0 %162 }
 0x274   :  { %454 = vrot.lane.b32.xlu0 %v3015_v36, %s2908_s5  ;;  %464 = vrot.lane.b32.xlu1 %v3023_v40, %s2908_s5  ;;  %v188_v51 = vcombine.low %v155_v39, %v3023_v40  ;;  %v189_v52 = vcombine.high %v155_v39, %v3023_v40  ;;  %v240_v9 = vcombine.low %v3015_v36, %v3027_v41 }
 0x275   :  { %v241_v17 = vcombine.high %v3015_v36, %v3027_v41 }
 0x276   :  { %v196_v57 = vrot.slane %v188_v51, %v3044_v53  ;;  %v203_v58 = vrot.slane %v189_v52, %v3044_v53  ;;  %v248_v20 = vrot.slane %v240_v9, %v3044_v53 }
 0x277   :  { %v157_v42 = vpop.permute.xlu1 %156  ;;  %v453_v6 = vpop.permute.xlu0 %452  ;;  %v255_v28 = vrot.slane %v241_v17, %v3044_v53 }
 0x278   :  { %462 = vrot.lane.b32.xlu0 %v3027_v41, %s2908_s5  ;;  %458 = vrot.lane.b32.xlu1 %v157_v42, %s2908_s5  ;;  %v204_v62 = vcombine.low %v180_v59, %v196_v57  ;;  %v205_v63 = vcombine.high %v180_v59, %v196_v57  ;;  %v220_v0 = vcombine.low %v187_v60, %v203_v58 }
 0x279   :  { %v221_v1 = vcombine.high %v187_v60, %v203_v58 }
 0x27a   :  { %v212_v2 = vrot.slane %v204_v62, %v3053_v61  ;;  %v219_v3 = vrot.slane %v205_v63, %v3053_v61  ;;  %v228_v4 = vrot.slane %v220_v0, %v3053_v61 }
 0x27b   :  { %v3030_v43 = vpop.permute.xlu1 %168  ;;  %v235_v5 = vrot.slane %v221_v1, %v3053_v61 }
 0x27c   :  { %756 = vrot.lane.b32.xlu0 %v145_v34, %s2909_s16  ;;  %466 = vrot.lane.b32.xlu1 %v3030_v43, %s2908_s5  ;;  %v256_v7 = vcombine.low %v157_v42, %v3030_v43  ;;  %v308_v8 = vcombine.low %v212_v2, %v219_v3  ;;  %v2551_v10 = vcombine.high %v212_v2, %v219_v3 }
 0x27d   :  { %v324_v11 = vcombine.low %v228_v4, %v235_v5  ;;  %v2552_v12 = vcombine.high %v228_v4, %v235_v5  ;;  %v257_v13 = vcombine.high %v157_v42, %v3030_v43 }
 0x27e   :  { %v264_v18 = vrot.slane %v256_v7, %v3044_v53  ;;  %v3067_v19 = vrot.slane %v308_v8, %v3044_v53  ;;  %v3071_v21 = vrot.slane %v2551_v10, %v3044_v53 }
 0x27f   :  { %v3074_v22 = vrot.slane %v324_v11, %v3044_v53  ;;  %v3077_v23 = vrot.slane %v2552_v12, %v3044_v53  ;;  %v271_v24 = vrot.slane %v257_v13, %v3044_v53 }
 0x280   :  { %758 = vrot.lane.b32.xlu1 %v3015_v36, %s2909_s16  ;;  %v272_v29 = vcombine.low %v248_v20, %v264_v18  ;;  %v273_v30 = vcombine.high %v248_v20, %v264_v18  ;;  %v340_v36 = vcombine.low %v3067_v19, %v3071_v21 }
 0x281   :  { %v288_v34 = vcombine.low %v255_v28, %v271_v24  ;;  %v289_v35 = vcombine.high %v255_v28, %v271_v24  ;;  %v356_v37 = vcombine.low %v3074_v22, %v3077_v23 }
 0x282   :  { %v280_v47 = vrot.slane %v272_v29, %v3053_v61  ;;  %v287_v49 = vrot.slane %v273_v30, %v3053_v61  ;;  %v3094_v59 = vrot.slane %v340_v36, %v3053_v61 }
 0x283   :  { %v296_v57 = vrot.slane %v288_v34, %v3053_v61  ;;  %v303_v58 = vrot.slane %v289_v35, %v3053_v61  ;;  %v3097_v60 = vrot.slane %v356_v37, %v3053_v61 }
 0x284   :  { %760 = vrot.lane.b32.xlu1 %v155_v39, %s2909_s16  ;;  %v376_v2 = vcombine.low %v280_v47, %v287_v49  ;;  %v2553_v3 = vcombine.high %v280_v47, %v287_v49 }
 0x285   :  { %v392_v11 = vcombine.low %v296_v57, %v303_v58  ;;  %v2554_v12 = vcombine.high %v296_v57, %v303_v58 }
 0x286   :  { %v3112_v36 = vrot.slane %v376_v2, %v3044_v53  ;;  %v3115_v37 = vrot.slane %v2553_v3, %v3044_v53 }
 0x288   :  { %762 = vrot.lane.b32.xlu1 %v157_v42, %s2909_s16 }
 0x2e2   :  { %v461_v14 = vpop.permute.xlu0 %460  ;;  %v457_v16 = vpop.permute.xlu1 %456 }
 0x2e3   :  { %v476_v25 = vcombine.low %v453_v6, %v461_v14  ;;  %v477_v26 = vcombine.high %v453_v6, %v461_v14 }
 0x2e5   :  { %v484_v39 = vrot.slane %v476_v25, %v3044_v53  ;;  %v491_v42 = vrot.slane %v477_v26, %v3044_v53 }
 0x2e6   :  { %v455_v27 = vpop.permute.xlu0 %454  ;;  %v465_v31 = vpop.permute.xlu1 %464 }
 0x2e7   :  { %v492_v32 = vcombine.low %v457_v16, %v465_v31  ;;  %v493_v33 = vcombine.high %v457_v16, %v465_v31 }
 0x2e9   :  { %v500_v44 = vrot.slane %v492_v32, %v3044_v53  ;;  %v507_v45 = vrot.slane %v493_v33, %v3044_v53 }
 0x2ea   :  { %v459_v50 = vpop.permute.xlu1 %458  ;;  %v463_v56 = vpop.permute.xlu0 %462 }
 0x2eb   :  { %v508_v51 = vcombine.low %v484_v39, %v500_v44  ;;  %v509_v52 = vcombine.high %v484_v39, %v500_v44  ;;  %v524_v54 = vcombine.low %v491_v42, %v507_v45  ;;  %v525_v55 = vcombine.high %v491_v42, %v507_v45 }
 0x2ec   :  { %v544_v4 = vcombine.low %v455_v27, %v463_v56  ;;  %v545_v5 = vcombine.high %v455_v27, %v463_v56 }
 0x2ed   :  { %v516_v62 = vrot.slane %v508_v51, %v3053_v61  ;;  %v523_v63 = vrot.slane %v509_v52, %v3053_v61  ;;  %v532_v0 = vrot.slane %v524_v54, %v3053_v61  ;;  %v539_v1 = vrot.slane %v525_v55, %v3053_v61 }
 0x2ee   :  { %v467_v6 = vpop.permute.xlu1 %466  ;;  %v552_v24 = vrot.slane %v544_v4, %v3044_v53  ;;  %v559_v25 = vrot.slane %v545_v5, %v3044_v53 }
 0x2ef   :  { %v612_v7 = vcombine.low %v516_v62, %v523_v63  ;;  %v2555_v8 = vcombine.high %v516_v62, %v523_v63  ;;  %v628_v9 = vcombine.low %v532_v0, %v539_v1  ;;  %v2556_v10 = vcombine.high %v532_v0, %v539_v1 }
 0x2f0   :  { %v560_v13 = vcombine.low %v459_v50, %v467_v6  ;;  %v561_v14 = vcombine.high %v459_v50, %v467_v6  ;;  %v3126_v62 = vrot.slane %v392_v11, %v3044_v53  ;;  %v3129_v63 = vrot.slane %v2554_v12, %v3044_v53 }
 0x2f1   :  { %v619_v16 = vrot.slane %v612_v7, %v3044_v53  ;;  %v627_v17 = vrot.slane %v2555_v8, %v3044_v53  ;;  %v635_v18 = vrot.slane %v628_v9, %v3044_v53  ;;  %v643_v20 = vrot.slane %v2556_v10, %v3044_v53 }
 0x2f2   :  { %v568_v26 = vrot.slane %v560_v13, %v3044_v53  ;;  %v575_v27 = vrot.slane %v561_v14, %v3044_v53  ;;  %v341_v11 = vcombine.high %v3067_v19, %v3071_v21  ;;  %v372_v12 = vcombine.low %v3094_v59, %v3097_v60 }
 0x2f3   :  { %v644_v28 = vcombine.low %v619_v16, %v627_v17  ;;  %v660_v29 = vcombine.low %v635_v18, %v643_v20  ;;  %v645_v30 = vcombine.high %v619_v16, %v627_v17  ;;  %v661_v31 = vcombine.high %v635_v18, %v643_v20 }
 0x2f4   :  { %v576_v32 = vcombine.low %v552_v24, %v568_v26  ;;  %v577_v33 = vcombine.high %v552_v24, %v568_v26  ;;  %v592_v34 = vcombine.low %v559_v25, %v575_v27  ;;  %v593_v35 = vcombine.high %v559_v25, %v575_v27 }
 0x2f5   :  { %v652_v39 = vrot.slane %v644_v28, %v3053_v61  ;;  %v668_v42 = vrot.slane %v660_v29, %v3053_v61  ;;  %v659_v52 = vrot.slane %v645_v30, %v3053_v61  ;;  %v675_v54 = vrot.slane %v661_v31, %v3053_v61 }
 0x2f6   :  { %v584_v44 = vrot.slane %v576_v32, %v3053_v61  ;;  %v591_v45 = vrot.slane %v577_v33, %v3053_v61  ;;  %v600_v47 = vrot.slane %v592_v34, %v3053_v61  ;;  %v607_v49 = vrot.slane %v593_v35, %v3053_v61 }
 0x2f7   :  { %v676_v50 = vcombine.low %v652_v39, %v668_v42  ;;  %v677_v51 = vcombine.high %v652_v39, %v668_v42  ;;  %v678_v8 = vcombine.low %v659_v52, %v675_v54  ;;  %v373_v13 = vcombine.high %v3094_v59, %v3097_v60 }
 0x2f8   :  { %v680_v55 = vcombine.low %v584_v44, %v591_v45  ;;  %v2557_v56 = vcombine.high %v584_v44, %v591_v45  ;;  %v696_v57 = vcombine.low %v600_v47, %v607_v49  ;;  %v2558_v58 = vcombine.high %v600_v47, %v607_v49 }
 0x2f9   :  { %v748_v0 = vpack.c.bf16 %v676_v50, %v676_v50  ;;  %v750_v1 = vpack.c.bf16 %v677_v51, %v677_v51  ;;  %v357_v14 = vcombine.high %v3074_v22, %v3077_v23  ;;  %v408_v19 = vcombine.low %v3112_v36, %v3115_v37 }
 0x2fa   :  { %v687_v2 = vrot.slane %v680_v55, %v3044_v53  ;;  %v695_v3 = vrot.slane %v2557_v56, %v3044_v53  ;;  %v703_v4 = vrot.slane %v696_v57, %v3044_v53  ;;  %v711_v5 = vrot.slane %v2558_v58, %v3044_v53 }
 0x2fb   :  { %v1065_v6 = vsel %vm1060_vm2, %v748_v0, 0  ;;  %v1157_v7 = vsel %vm1060_vm2, %v750_v1, 0  ;;  %v424_v21 = vcombine.low %v3126_v62, %v3129_v63  ;;  %v752_v18 = vpack.c.bf16 %v678_v8, %v678_v8 }
 0x2fc   :  { %2661 = vmatpush3.bf16.xpose.msra.mxu0 %v1065_v6  ;;  %2673 = vmatpush3.bf16.xpose.msra.mxu1 %v1157_v7  ;;  %v712_v9 = vcombine.low %v687_v2, %v695_v3  ;;  %v728_v10 = vcombine.low %v703_v4, %v711_v5  ;;  %v444_v24 = vpack.c.bf16 %v372_v12, %v372_v12  ;;  %v1432_v7 = vand.u32 127, %v177_v46 }
 0x2fd   :  { %2666 = vmatprep.subr.bf16.mxu0 %v2903_v15  ;;  %2684 = vmatprep.subr.bf16.mxu1 %v2903_v15  ;;  %v446_v25 = vpack.c.bf16 %v373_v13, %v373_v13  ;;  %v355_v59 = vrot.slane %v341_v11, %v3053_v61  ;;  %v371_v60 = vrot.slane %v357_v14, %v3053_v61  ;;  %v1249_v27 = vsel %vm1060_vm2, %v752_v18, 0 }
 0x2fe   :  { %v720_v16 = vrot.slane %v712_v9, %v3053_v61  ;;  %v736_v17 = vrot.slane %v728_v10, %v3053_v61  ;;  %v416_v22 = vrot.slane %v408_v19, %v3053_v61  ;;  %v432_v23 = vrot.slane %v424_v21, %v3053_v61 }
 0x2ff   :  { %v679_v28 = vcombine.high %v659_v52, %v675_v54  ;;  %v713_v31 = vcombine.high %v687_v2, %v695_v3  ;;  %v729_v32 = vcombine.high %v703_v4, %v711_v5  ;;  %v374_v33 = vcombine.low %v355_v59, %v371_v60 }
 0x300   :  { %v744_v20 = vcombine.low %v720_v16, %v736_v17  ;;  %v745_v30 = vcombine.high %v720_v16, %v736_v17  ;;  %v440_v34 = vcombine.low %v416_v22, %v432_v23  ;;  %v375_v52 = vcombine.high %v355_v59, %v371_v60 }
 0x301   :  { %v754_v35 = vpack.c.bf16 %v679_v28, %v679_v28  ;;  %v727_v42 = vrot.slane %v713_v31, %v3053_v61  ;;  %v743_v44 = vrot.slane %v729_v32, %v3053_v61  ;;  %v448_v45 = vpack.c.bf16 %v374_v33, %v374_v33 }
 0x302   :  { %v749_v26 = vpack.c.bf16 %v744_v20, %v744_v20  ;;  %v751_v39 = vpack.c.bf16 %v745_v30, %v745_v30  ;;  %v445_v47 = vpack.c.bf16 %v440_v34, %v440_v34  ;;  %v441_v54 = vcombine.high %v416_v22, %v432_v23 }
 0x303   :  { %2663 = vmatmul.mubr.msk.bf16.vlgmr.msra.gmra.mxu0 %vm1060_vm2, %v444_v24  ;;  %2675 = vmatmul.mubr.msk.bf16.vlgmr.msra.gmra.mxu1 %vm1060_vm2, %v446_v25  ;;  %v1341_v49 = vsel %vm1060_vm2, %v754_v35, 0  ;;  %v746_v51 = vcombine.low %v727_v42, %v743_v44  ;;  %v409_v55 = vcombine.high %v3112_v36, %v3115_v37  ;;  %v425_v56 = vcombine.high %v3126_v62, %v3129_v63 }
 0x304   :  { %v1111_v29 = vsel %vm1060_vm2, %v749_v26, 0  ;;  %2685 = vmatpush3.bf16.xpose.msra.mxu1 %v1249_v27  ;;  %2668 = vmatprep.mubr.msk.bf16.mxu0 %vm2904_vm1, %v2903_v15  ;;  %v1203_v50 = vsel %vm1060_vm2, %v751_v39, 0  ;;  %v450_v58 = vpack.c.bf16 %v375_v52, %v375_v52  ;;  %v447_v0 = vpack.c.bf16 %v441_v54, %v441_v54 }
 0x305   :  { %2667 = vmatpush3.bf16.xpose.msra.mxu0 %v1111_v29  ;;  %2686 = vmatprep.mubr.msk.bf16.mxu1 %vm2904_vm1, %v2903_v15  ;;  %v753_v57 = vpack.c.bf16 %v746_v51, %v746_v51  ;;  %v423_v1 = vrot.slane %v409_v55, %v3053_v61  ;;  %v439_v2 = vrot.slane %v425_v56, %v3053_v61 }
 0x306   :  { %2678 = vmatprep.subr.bf16.mxu0 %v2903_v15  ;;  %2696 = vmatprep.subr.bf16.mxu1 %v2903_v15  ;;  %v747_v4 = vcombine.high %v727_v42, %v743_v44  ;;  %vm3203_vm3 = vcmp.ge.s32.totalorder %v3039_v48, %v1432_v7 }
 0x307   :  { %v1295_v3 = vsel %vm1060_vm2, %v753_v57, 0  ;;  %v442_v36 = vcombine.low %v423_v1, %v439_v2  ;;  %v443_v5 = vcombine.high %v423_v1, %v439_v2 }
 0x308   :  { %v755_v37 = vpack.c.bf16 %v747_v4, %v747_v4  ;;  %v3244_v4 = vpop.permute.xlu1 %758 }
 0x309   :  { %v449_v62 = vpack.c.bf16 %v442_v36, %v442_v36  ;;  %v451_v6 = vpack.c.bf16 %v443_v5, %v443_v5  ;;  %v3246_v36 = vpop.permute.xlu0 %756 }
 0x30a   :  { %v1387_v63 = vsel %vm1060_vm2, %v755_v37, 0 }
 0x30b   :  { %2687 = vmatmul.mubr.msk.bf16.vlgmr.msra.gmra.mxu1 %vm1060_vm2, %v448_v45 }
 0x30c   :  { %2669 = vmatmul.mubr.msk.bf16.vlgmr.msra.gmra.mxu0 %vm1060_vm2, %v445_v47  ;;  %2697 = vmatpush3.bf16.xpose.msra.mxu1 %v1341_v49  ;;  %v3248_v37 = vpop.permute.xlu1 %760 }
 0x30d   :  { %2679 = vmatpush3.bf16.xpose.msra.mxu0 %v1203_v50  ;;  %2680 = vmatprep.mubr.msk.bf16.mxu0 %vm2904_vm1, %v2903_v15 }
 0x30e   :  { %2698 = vmatprep.mubr.msk.bf16.mxu1 %vm2904_vm1, %v2903_v15  ;;  %2690 = vmatprep.subr.bf16.mxu0 %v2903_v15 }
 0x30f   :  { %2708 = vmatprep.subr.bf16.mxu1 %v2903_v15 }
 0x313   :  { %2699 = vmatmul.mubr.msk.bf16.vlgmr.msra.gmra.mxu1 %vm1060_vm2, %v450_v58 }
 0x314   :  { %2681 = vmatmul.mubr.msk.bf16.vlgmr.msra.gmra.mxu0 %vm1060_vm2, %v447_v0  ;;  %2710 = vmatprep.mubr.msk.bf16.mxu1 %vm2904_vm1, %v2903_v15 }
 0x315   :  { %2691 = vmatpush3.bf16.xpose.msra.mxu0 %v1295_v3  ;;  %2692 = vmatprep.mubr.msk.bf16.mxu0 %vm2904_vm1, %v2903_v15 }
 0x316   :  { %2702 = vmatprep.subr.bf16.mxu0 %v2903_v15 }
 0x31c   :  { %2693 = vmatmul.mubr.msk.bf16.vlgmr.msra.gmra.mxu0 %vm1060_vm2, %v449_v62 }
 0x31d   :  { %2703 = vmatpush3.bf16.xpose.msra.mxu0 %v1387_v63  ;;  %2704 = vmatprep.mubr.msk.bf16.mxu0 %vm2904_vm1, %v2903_v15 }
 0x31e   :  { %2714 = vmatprep.subr.bf16.mxu0 %v2903_v15 }
 0x324   :  { %2705 = vmatmul.mubr.msk.bf16.vlgmr.msra.gmra.mxu0 %vm1060_vm2, %v451_v6  ;;  %v3250_v6 = vpop.permute.xlu1 %762 }
 0x325   :  { %2716 = vmatprep.mubr.msk.bf16.mxu0 %vm2904_vm1, %v2903_v15 }
 0x3c3   :  { %v1101_v9 = vpop.f32.mrf.mxu0  ;;  %v1193_v10 = vpop.f32.mrf.mxu1 }
 0x3c4   :  { %v1436_v11 = vsel %vm3203_vm3, %v1101_v9, -inf  ;;  %v3212_v16 = vsel %vm3203_vm3, %v1193_v10, -inf }
 0x3c5   :  { %v2664_v12 = vpop.f32.mrf.mxu0  ;;  %v2676_v13 = vpop.f32.mrf.mxu1  ;;  %v1444_v14 = vsel %vm1060_vm2, %v1436_v11, -inf  ;;  %v1450_v21 = vsel %vm1060_vm2, %v3212_v16, -inf }
 0x3c6   :  { %1445 = vmax.xlane.f32.xlu0 %v1444_v14 }
 0x3c7   :  { %v1104_v46 = vpop.f32.mrf.mxu0  ;;  %v1196_v17 = vpop.f32.mrf.mxu1 }
 0x3c9   :  { %v2665_v48 = vpop.f32.mrf.mxu0  ;;  %v2677_v19 = vpop.f32.mrf.mxu1 }
 0x3ca   :  { %1451 = vmax.xlane.f32.xlu0 %v1450_v21 }
 0x3cb   :  { %v1285_v18 = vpop.f32.mrf.mxu1 }
 0x3cc   :  { %v1147_v20 = vpop.f32.mrf.mxu0  ;;  %v3218_v24 = vsel %vm3203_vm3, %v1285_v18, -inf }
 0x3cd   :  { %v1437_v25 = vsel %vm3203_vm3, %v1147_v20, -inf  ;;  %v2688_v59 = vpop.f32.mrf.mxu1  ;;  %v1456_v60 = vsel %vm1060_vm2, %v3218_v24, -inf }
 0x3ce   :  { %v2670_v26 = vpop.f32.mrf.mxu0  ;;  %1457 = vmax.xlane.f32.xlu0 %v1456_v60  ;;  %v1447_v22 = vsel %vm1060_vm2, %v1437_v25, -inf }
 0x3cf   :  { %1448 = vmax.xlane.f32.xlu1 %v1447_v22  ;;  %v1288_v23 = vpop.f32.mrf.mxu1 }
 0x3d0   :  { %v1150_v27 = vpop.f32.mrf.mxu0 }
 0x3d1   :  { %v2689_v28 = vpop.f32.mrf.mxu1 }
 0x3d2   :  { %v2671_v29 = vpop.f32.mrf.mxu0 }
 0x3d3   :  { %v1377_v30 = vpop.f32.mrf.mxu1 }
 0x3d4   :  { %v1239_v31 = vpop.f32.mrf.mxu0  ;;  %v1442_v39 = vsel %vm3203_vm3, %v1377_v30, -inf }
 0x3d5   :  { %v3227_v32 = vsel %vm3203_vm3, %v1239_v31, -inf  ;;  %v2700_v33 = vpop.f32.mrf.mxu1  ;;  %v1462_v49 = vsel %vm1060_vm2, %v1442_v39, -inf }
 0x3d6   :  { %v2682_v34 = vpop.f32.mrf.mxu0  ;;  %v1453_v35 = vsel %vm1060_vm2, %v3227_v32, -inf }
 0x3d7   :  { %1454 = vmax.xlane.f32.xlu0 %v1453_v35  ;;  %v1380_v42 = vpop.f32.mrf.mxu1 }
 0x3d8   :  { %v1242_v44 = vpop.f32.mrf.mxu0 }
 0x3d9   :  { %v2701_v45 = vpop.f32.mrf.mxu1 }
 0x3da   :  { %v2683_v47 = vpop.f32.mrf.mxu0 }
 0x3db   :  { %1463 = vmax.xlane.f32.xlu0 %v1462_v49 }
 0x3dc   :  { %v1331_v50 = vpop.f32.mrf.mxu0 }
 0x3dd   :  { %v1441_v51 = vsel %vm3203_vm3, %v1331_v50, -inf }
 0x3de   :  { %v2694_v52 = vpop.f32.mrf.mxu0  ;;  %v1459_v54 = vsel %vm1060_vm2, %v1441_v51, -inf }
 0x3df   :  { %1460 = vmax.xlane.f32.xlu1 %v1459_v54 }
 0x3e0   :  { %v1334_v55 = vpop.f32.mrf.mxu0 }
 0x3e2   :  { %v2695_v56 = vpop.f32.mrf.mxu0 }
 0x3e4   :  { %v1423_v57 = vpop.f32.mrf.mxu0 }
 0x3e5   :  { %v1443_v58 = vsel %vm3203_vm3, %v1423_v57, -inf }
 0x3e6   :  { %v2706_v0 = vpop.f32.mrf.mxu0  ;;  %v1465_v1 = vsel %vm1060_vm2, %v1443_v58, -inf }
 0x3e7   :  { %1466 = vmax.xlane.f32.xlu1 %v1465_v1 }
 0x3e8   :  { %v1426_v2 = vpop.f32.mrf.mxu0 }
 0x3ea   :  { %v2707_v3 = vpop.f32.mrf.mxu0 }
 0x3f1   :  { %764 = vrot.lane.b32.xlu0 %v3020_v38, %s2909_s16 }
 0x3f8   :  { %766 = vrot.lane.b32.xlu1 %v3027_v41, %s2909_s16 }
 0x44f   :  { %v1446_v62 = vpop.xlane.xlu0 %1445 }
 0x450   :  { %v1468_v63 = vsub.f32 %v1436_v11, %v1446_v62 }
 0x452   :  { %v1476_v5 = vmul.f32 1.442695, %v1468_v63 }
 0x453   :  { %v1452_v11 = vpop.xlane.xlu0 %1451 }
 0x454   :  { %2839 = vpow2.f32 %v1476_v5  ;;  %v1470_v14 = vsub.f32 %v3212_v16, %v1452_v11 }
 0x456   :  { %v1480_v17 = vmul.f32 1.442695, %v1470_v14 }
 0x457   :  { %v1458_v13 = vpop.xlane.xlu0 %1457 }
 0x458   :  { %v1449_v7 = vpop.xlane.xlu1 %1448  ;;  %v1472_v48 = vsub.f32 %v3218_v24, %v1458_v13 }
 0x459   :  { %v1469_v8 = vsub.f32 %v1437_v25, %v1449_v7 }
 0x45a   :  { %v1484_v21 = vmul.f32 1.442695, %v1472_v48 }
 0x45b   :  { %v1478_v9 = vmul.f32 1.442695, %v1469_v8 }
 0x45d   :  { %2841 = vpow2.f32 %v1478_v9 }
 0x45e   :  { %2843 = vpow2.f32 %v1480_v17 }
 0x45f   :  { %2845 = vpow2.f32 %v1484_v21 }
 0x460   :  { %v1455_v46 = vpop.xlane.xlu0 %1454 }
 0x461   :  { %v3252_v38 = vpop.eup %2839  ;;  %v1471_v20 = vsub.f32 %v3227_v32, %v1455_v46 }
 0x462   :  { %v1492_v41 = vsel %vm1060_vm2, %v3252_v38, 0.0 }
 0x463   :  { %1493 = vadd.xlane.f32.xlu0 %v1492_v41  ;;  %v1482_v26 = vmul.f32 1.442695, %v1471_v20 }
 0x464   :  { %v1464_v25 = vpop.xlane.xlu0 %1463 }
 0x468   :  { %v1461_v19 = vpop.xlane.xlu1 %1460  ;;  %v765_v42 = vpop.permute.xlu0 %764 }
 0x469   :  { %v1473_v18 = vsub.f32 %v1441_v51, %v1461_v19  ;;  %v780_v45 = vcombine.low %v3246_v36, %v765_v42  ;;  %v781_v47 = vcombine.high %v3246_v36, %v765_v42 }
 0x46a   :  { %v3256_v10 = vpop.eup %2841 }
 0x46b   :  { %v1495_v12 = vsel %vm1060_vm2, %v3256_v10, 0.0  ;;  %v1486_v60 = vmul.f32 1.442695, %v1473_v18  ;;  %v3267_v23 = vpop.eup %2843  ;;  %v788_v54 = vrot.slane %v780_v45, %v3044_v53  ;;  %v795_v55 = vrot.slane %v781_v47, %v3044_v53 }
 0x46c   :  { %1496 = vadd.xlane.f32.xlu1 %v1495_v12  ;;  %v1498_v24 = vsel %vm1060_vm2, %v3267_v23, 0.0  ;;  %v3271_v27 = vpop.eup %2845 }
 0x46d   :  { %2847 = vpow2.f32 %v1486_v60  ;;  %v1504_v28 = vsel %vm1060_vm2, %v3271_v27, 0.0 }
 0x46e   :  { %2849 = vpow2.f32 %v1482_v26 }
 0x470   :  { %v1467_v59 = vpop.xlane.xlu1 %1466 }
 0x474   :  { %v767_v50 = vpop.permute.xlu1 %766 }
 0x475   :  { %v848_v36 = vcombine.low %v3244_v4, %v767_v50  ;;  %v849_v7 = vcombine.high %v3244_v4, %v767_v50 }
 0x477   :  { %v856_v13 = vrot.slane %v848_v36, %v3044_v53  ;;  %v863_v21 = vrot.slane %v849_v7, %v3044_v53 }
 0x479   :  { %768 = vrot.lane.b32.xlu0 %v3023_v40, %s2909_s16  ;;  %v1474_v40 = vsub.f32 %v1442_v39, %v1464_v25 }
 0x47a   :  { %v3275_v29 = vpop.eup %2847 }
 0x47b   :  { %v1488_v22 = vmul.f32 1.442695, %v1474_v40  ;;  %v3277_v30 = vpop.eup %2849  ;;  %v1507_v31 = vsel %vm1060_vm2, %v3275_v29, 0.0 }
 0x47c   :  { %v1501_v33 = vsel %vm1060_vm2, %v3277_v30, 0.0 }
 0x47d   :  { %770 = vrot.lane.b32.xlu1 %v3030_v43, %s2909_s16  ;;  %v1475_v43 = vsub.f32 %v1443_v58, %v1467_v59  ;;  %2851 = vpow2.f32 %v1488_v22 }
 0x47f   :  { %v1490_v16 = vmul.f32 1.442695, %v1475_v43 }
 0x481   :  { %2853 = vpow2.f32 %v1490_v16 }
 0x48a   :  { %v3281_v32 = vpop.eup %2851 }
 0x48b   :  { %v1510_v35 = vsel %vm1060_vm2, %v3281_v32, 0.0 }
 0x48e   :  { %v3285_v34 = vpop.eup %2853 }
 0x48f   :  { %v1513_v39 = vsel %vm1060_vm2, %v3285_v34, 0.0 }
 0x498   :  { %1499 = vadd.xlane.f32.xlu0 %v1498_v24 }
 0x49c   :  { %1505 = vadd.xlane.f32.xlu0 %v1504_v28 }
 0x4a0   :  { %1508 = vadd.xlane.f32.xlu0 %v1507_v31 }
 0x4a1   :  { %1502 = vadd.xlane.f32.xlu1 %v1501_v33 }
 0x4a4   :  { %1511 = vadd.xlane.f32.xlu0 %v1510_v35 }
 0x4a5   :  { %1514 = vadd.xlane.f32.xlu1 %v1513_v39 }
 0x4ec   :  { %v1494_v44 = vpop.xlane.xlu0 %1493 }
 0x4ed   :  { %2855 = vrcp.f32 %v1494_v44 }
 0x4f0   :  { %v769_v49 = vpop.permute.xlu0 %768 }
 0x4f1   :  { %v796_v51 = vcombine.low %v3248_v37, %v769_v49  ;;  %v797_v52 = vcombine.high %v3248_v37, %v769_v49 }
 0x4f3   :  { %v804_v56 = vrot.slane %v796_v51, %v3044_v53  ;;  %v811_v57 = vrot.slane %v797_v52, %v3044_v53 }
 0x4f5   :  { %v812_v58 = vcombine.low %v788_v54, %v804_v56  ;;  %v813_v0 = vcombine.high %v788_v54, %v804_v56  ;;  %v828_v1 = vcombine.low %v795_v55, %v811_v57  ;;  %v829_v2 = vcombine.high %v795_v55, %v811_v57  ;;  %v1497_v3 = vpop.xlane.xlu1 %1496 }
 0x4f6   :  { %2857 = vrcp.f32 %v1497_v3 }
 0x4f7   :  { %v820_v62 = vrot.slane %v812_v58, %v3053_v61  ;;  %v827_v37 = vrot.slane %v813_v0, %v3053_v61  ;;  %v836_v63 = vrot.slane %v828_v1, %v3053_v61  ;;  %v843_v5 = vrot.slane %v829_v2, %v3053_v61 }
 0x4f9   :  { %v916_v8 = vcombine.low %v820_v62, %v827_v37  ;;  %v2559_v9 = vcombine.high %v820_v62, %v827_v37  ;;  %v932_v41 = vcombine.low %v836_v63, %v843_v5  ;;  %v2560_v12 = vcombine.high %v836_v63, %v843_v5  ;;  %v771_v11 = vpop.permute.xlu1 %770 }
 0x4fa   :  { %v864_v14 = vcombine.low %v3250_v6, %v771_v11  ;;  %v865_v46 = vcombine.high %v3250_v6, %v771_v11  ;;  %v2856_v16 = vpop.eup %2855 }
 0x4fb   :  { %v3309_v17 = vrot.slane %v916_v8, %v3044_v53  ;;  %v3312_v48 = vrot.slane %v2559_v9, %v3044_v53  ;;  %v3315_v19 = vrot.slane %v932_v41, %v3044_v53  ;;  %v3318_v4 = vrot.slane %v2560_v12, %v3044_v53 }
 0x4fc   :  { %v872_v18 = vrot.slane %v864_v14, %v3044_v53  ;;  %v879_v20 = vrot.slane %v865_v46, %v3044_v53  ;;  %v1524_v50 = vmul.f32 %v2856_v16, %v3252_v38 }
 0x4fd   :  { %v948_v6 = vcombine.low %v3309_v17, %v3312_v48  ;;  %v964_v25 = vcombine.low %v3315_v19, %v3318_v4  ;;  %v965_v11 = vcombine.high %v3315_v19, %v3318_v4 }
 0x4fe   :  { %v880_v59 = vcombine.low %v856_v13, %v872_v18  ;;  %v881_v40 = vcombine.high %v856_v13, %v872_v18  ;;  %v896_v60 = vcombine.low %v863_v21, %v879_v20  ;;  %v897_v26 = vcombine.high %v863_v21, %v879_v20 }
 0x4ff   :  { %v956_v43 = vrot.slane %v948_v6, %v3053_v61  ;;  %v972_v22 = vrot.slane %v964_v25, %v3053_v61  ;;  %v1532_v1 = vpack.c.bf16 %v1524_v50, %v1524_v50  ;;  %v979_v46 = vrot.slane %v965_v11, %v3053_v61 }
 0x500   :  { %v888_v24 = vrot.slane %v880_v59, %v3053_v61  ;;  %v895_v28 = vrot.slane %v881_v40, %v3053_v61  ;;  %v904_v31 = vrot.slane %v896_v60, %v3053_v61  ;;  %v911_v33 = vrot.slane %v897_v26, %v3053_v61 }
 0x501   :  { %v980_v35 = vcombine.low %v956_v43, %v972_v22  ;;  %v981_v39 = vcombine.high %v956_v43, %v972_v22 }
 0x502   :  { %v984_v42 = vcombine.low %v888_v24, %v895_v28  ;;  %v2561_v44 = vcombine.high %v888_v24, %v895_v28  ;;  %v1000_v45 = vcombine.low %v904_v31, %v911_v33  ;;  %v2562_v47 = vcombine.high %v904_v31, %v911_v33 }
 0x503   :  { %v1052_v49 = vpack.c.bf16 %v980_v35, %v980_v35  ;;  %v1054_v57 = vpack.c.bf16 %v981_v39, %v981_v39  ;;  %v2858_v3 = vpop.eup %2857 }
 0x504   :  { %v991_v51 = vrot.slane %v984_v42, %v3044_v53  ;;  %v999_v52 = vrot.slane %v2561_v44, %v3044_v53  ;;  %v1007_v54 = vrot.slane %v1000_v45, %v3044_v53  ;;  %v1015_v55 = vrot.slane %v2562_v47, %v3044_v53 }
 0x505   :  { %v1545_v56 = vsel %vm1543_vm4, %v1052_v49, 0  ;;  %v1637_v36 = vsel %vm1543_vm4, %v1054_v57, 0  ;;  %v1525_v5 = vmul.f32 %v2858_v3, %v3256_v10  ;;  %v949_v10 = vcombine.high %v3309_v17, %v3312_v48 }
 0x506   :  { %2709 = vmatpush3.bf16.msra.mxu1 %v1545_v56  ;;  %v1016_v58 = vcombine.low %v991_v51, %v999_v52  ;;  %v1032_v0 = vcombine.low %v1007_v54, %v1015_v55  ;;  %v1017_v25 = vcombine.high %v991_v51, %v999_v52  ;;  %v1033_v59 = vcombine.high %v1007_v54, %v1015_v55 }
 0x507   :  { %2720 = vmatprep.subr.bf16.mxu1 %v2903_v15  ;;  %v1533_v9 = vpack.c.bf16 %v1525_v5, %v1525_v5  ;;  %v963_v14 = vrot.slane %v949_v10, %v3053_v61 }
 0x508   :  { %v1024_v2 = vrot.slane %v1016_v58, %v3053_v61  ;;  %v1040_v38 = vrot.slane %v1032_v0, %v3053_v61  ;;  %v1031_v19 = vrot.slane %v1017_v25, %v3053_v61  ;;  %v1047_v4 = vrot.slane %v1033_v59, %v3053_v61 }
 0x509   :  { %2711 = vmatmul.mubr.msk.bf16.vlgmr.msra.gmra.mxu1 %vm1060_vm2, %v1532_v1  ;;  %v982_v20 = vcombine.low %v963_v14, %v979_v46  ;;  %v983_v16 = vcombine.high %v963_v14, %v979_v46 }
 0x50a   :  { %2721 = vmatpush3.bf16.msra.mxu1 %v1637_v36  ;;  %v1048_v62 = vcombine.low %v1024_v2, %v1040_v38  ;;  %v1049_v37 = vcombine.high %v1024_v2, %v1040_v38  ;;  %2722 = vmatprep.mubr.msk.bf16.mxu1 %vm2904_vm1, %v2903_v15  ;;  %v1050_v24 = vcombine.low %v1031_v19, %v1047_v4 }
 0x50b   :  { %2732 = vmatprep.subr.bf16.mxu1 %v2903_v15  ;;  %v1056_v48 = vpack.c.bf16 %v982_v20, %v982_v20  ;;  %v1058_v31 = vpack.c.bf16 %v983_v16, %v983_v16 }
 0x50c   :  { %v1053_v63 = vpack.c.bf16 %v1048_v62, %v1048_v62  ;;  %v1055_v8 = vpack.c.bf16 %v1049_v37, %v1049_v37  ;;  %v1057_v35 = vpack.c.bf16 %v1050_v24, %v1050_v24 }
 0x50d   :  { %v1729_v22 = vsel %vm1543_vm4, %v1056_v48, 0  ;;  %v1821_v47 = vsel %vm1543_vm4, %v1058_v31, 0 }
 0x50e   :  { %v1591_v7 = vsel %vm1543_vm4, %v1053_v63, 0  ;;  %v1683_v41 = vsel %vm1543_vm4, %v1055_v8, 0  ;;  %v1775_v49 = vsel %vm1543_vm4, %v1057_v35, 0 }
 0x50f   :  { %2715 = vmatpush3.bf16.msra.mxu0 %v1591_v7 }
 0x510   :  { %2726 = vmatprep.subr.bf16.mxu0 %v2903_v15 }
 0x512   :  { %2717 = vmatmul.mubr.msk.bf16.vlgmr.msra.gmra.mxu0 %vm1060_vm2, %v1533_v9 }
 0x513   :  { %2727 = vmatpush3.bf16.msra.mxu0 %v1683_v41  ;;  %2728 = vmatprep.mubr.msk.bf16.mxu0 %vm2904_vm1, %v2903_v15 }
 0x514   :  { %2738 = vmatprep.subr.bf16.mxu0 %v2903_v15 }
 0x521   :  { %v1500_v12 = vpop.xlane.xlu0 %1499 }
 0x522   :  { %2859 = vrcp.f32 %v1500_v12 }
 0x525   :  { %v1506_v13 = vpop.xlane.xlu0 %1505 }
 0x526   :  { %2861 = vrcp.f32 %v1506_v13 }
 0x529   :  { %v1509_v21 = vpop.xlane.xlu0 %1508 }
 0x52a   :  { %v1503_v18 = vpop.xlane.xlu1 %1502 }
 0x52b   :  { %2863 = vrcp.f32 %v1503_v18 }
 0x52d   :  { %v1512_v6 = vpop.xlane.xlu0 %1511 }
 0x52e   :  { %2865 = vrcp.f32 %v1512_v6  ;;  %v1515_v43 = vpop.xlane.xlu1 %1514 }
 0x52f   :  { %v2860_v40 = vpop.eup %2859  ;;  %2867 = vrcp.f32 %v1509_v21 }
 0x530   :  { %v1526_v17 = vmul.f32 %v2860_v40, %v3267_v23  ;;  %2869 = vrcp.f32 %v1515_v43 }
 0x532   :  { %v1534_v60 = vpack.c.bf16 %v1526_v17, %v1526_v17 }
 0x533   :  { %v2862_v26 = vpop.eup %2861 }
 0x534   :  { %2723 = vmatmul.mubr.msk.bf16.vlgmr.msra.gmra.mxu1 %vm1060_vm2, %v1534_v60  ;;  %v1528_v23 = vmul.f32 %v2862_v26, %v3271_v27  ;;  %v1051_v27 = vcombine.high %v1031_v19, %v1047_v4 }
 0x535   :  { %2733 = vmatpush3.bf16.msra.mxu1 %v1729_v22  ;;  %2734 = vmatprep.mubr.msk.bf16.mxu1 %vm2904_vm1, %v2903_v15 }
 0x536   :  { %2744 = vmatprep.subr.bf16.mxu1 %v2903_v15  ;;  %v1536_v39 = vpack.c.bf16 %v1528_v23, %v1528_v23  ;;  %v1059_v51 = vpack.c.bf16 %v1051_v27, %v1051_v27 }
 0x538   :  { %v2864_v28 = vpop.eup %2863  ;;  %v1867_v56 = vsel %vm1543_vm4, %v1059_v51, 0 }
 0x539   :  { %v1527_v33 = vmul.f32 %v2864_v28, %v3277_v30 }
 0x53b   :  { %v2866_v42 = vpop.eup %2865  ;;  %v1535_v44 = vpack.c.bf16 %v1527_v33, %v1527_v33 }
 0x53c   :  { %v2868_v45 = vpop.eup %2867  ;;  %2735 = vmatmul.mubr.msk.bf16.vlgmr.msra.gmra.mxu1 %vm1060_vm2, %v1536_v39  ;;  %v1530_v30 = vmul.f32 %v2866_v42, %v3281_v32 }
 0x53d   :  { %2729 = vmatmul.mubr.msk.bf16.vlgmr.msra.gmra.mxu0 %vm1060_vm2, %v1535_v44  ;;  %2745 = vmatpush3.bf16.msra.mxu1 %v1821_v47  ;;  %v1529_v50 = vmul.f32 %v2868_v45, %v3275_v29  ;;  %v2870_v55 = vpop.eup %2869 }
 0x53e   :  { %2739 = vmatpush3.bf16.msra.mxu0 %v1775_v49  ;;  %2740 = vmatprep.mubr.msk.bf16.mxu0 %vm2904_vm1, %v2903_v15  ;;  %v1538_v52 = vpack.c.bf16 %v1530_v30, %v1530_v30  ;;  %v1531_v29 = vmul.f32 %v2870_v55, %v3285_v34 }
 0x53f   :  { %2746 = vmatprep.mubr.msk.bf16.mxu1 %vm2904_vm1, %v2903_v15  ;;  %2750 = vmatprep.subr.bf16.mxu0 %v2903_v15  ;;  %v1537_v54 = vpack.c.bf16 %v1529_v50, %v1529_v50 }
 0x540   :  { %2756 = vmatprep.subr.bf16.mxu1 %v2903_v15  ;;  %v1539_v32 = vpack.c.bf16 %v1531_v29, %v1531_v29 }
 0x544   :  { %2747 = vmatmul.mubr.msk.bf16.vlgmr.msra.gmra.mxu1 %vm1060_vm2, %v1538_v52 }
 0x545   :  { %2741 = vmatmul.mubr.msk.bf16.vlgmr.msra.gmra.mxu0 %vm1060_vm2, %v1537_v54  ;;  %2760 = vmatprep.mubr.msk.bf16.mxu1 %vm2904_vm1, %v2903_v15 }
 0x546   :  { %2751 = vmatpush3.bf16.msra.mxu0 %v1867_v56  ;;  %2752 = vmatprep.mubr.msk.bf16.mxu0 %vm2904_vm1, %v2903_v15 }
 0x547   :  { %2764 = vmatprep.subr.bf16.mxu0 %v2903_v15 }
 0x54d   :  { %2753 = vmatmul.mubr.msk.bf16.vlgmr.msra.gmra.mxu0 %vm1060_vm2, %v1539_v32 }
 0x54e   :  { %2768 = vmatprep.mubr.msk.bf16.mxu0 %vm2904_vm1, %v2903_v15 }
 0x5c9   :  { %v1581_v57 = vpop.f32.mrf.mxu1 }
 0x5cb   :  { %v2712_v58 = vpop.f32.mrf.mxu1 }
 0x5cd   :  { %v1584_v0 = vpop.f32.mrf.mxu1 }
 0x5cf   :  { %v2713_v1 = vpop.f32.mrf.mxu1 }
 0x5d2   :  { %v1627_v2 = vpop.f32.mrf.mxu0 }
 0x5d4   :  { %v2718_v38 = vpop.f32.mrf.mxu0 }
 0x5d6   :  { %v1630_v3 = vpop.f32.mrf.mxu0 }
 0x5d8   :  { %v2719_v36 = vpop.f32.mrf.mxu0 }
 0x5f4   :  { %v1673_v62 = vpop.f32.mrf.mxu1 }
 0x5f6   :  { %v2724_v37 = vpop.f32.mrf.mxu1 }
 0x5f8   :  { %v1676_v63 = vpop.f32.mrf.mxu1 }
 0x5fa   :  { %v2725_v34 = vpop.f32.mrf.mxu1 }
 0x5fc   :  { %v1765_v5 = vpop.f32.mrf.mxu1 }
 0x5fd   :  { %v1719_v7 = vpop.f32.mrf.mxu0  ;;  %v1909_v11 = vcombine.low %v1581_v57, %v1765_v5  ;;  %v1910_v13 = vcombine.high %v1581_v57, %v1765_v5 }
 0x5fe   :  { %v2736_v8 = vpop.f32.mrf.mxu1 }
 0x5ff   :  { %v2730_v9 = vpop.f32.mrf.mxu0  ;;  %v1917_v25 = vrot.slane %v1909_v11, %v3044_v53  ;;  %v1924_v59 = vrot.slane %v1910_v13, %v3044_v53 }
 0x600   :  { %v1768_v41 = vpop.f32.mrf.mxu1 }
 0x601   :  { %v1722_v12 = vpop.f32.mrf.mxu0 }
 0x602   :  { %v2737_v10 = vpop.f32.mrf.mxu1 }
 0x603   :  { %v2731_v14 = vpop.f32.mrf.mxu0 }
 0x604   :  { %v1857_v46 = vpop.f32.mrf.mxu1 }
 0x605   :  { %v1811_v21 = vpop.f32.mrf.mxu0  ;;  %v1925_v18 = vcombine.low %v1673_v62, %v1857_v46  ;;  %v1926_v20 = vcombine.high %v1673_v62, %v1857_v46  ;;  %v2823_v46 = vld [vmem:[%s3523_s2 + $0x8] sm:$0xff]  }
 0x606   :  { %v2748_v6 = vpop.f32.mrf.mxu1  ;;  %v1977_v35 = vcombine.low %v1627_v2, %v1811_v21  ;;  %v1978_v39 = vcombine.high %v1627_v2, %v1811_v21  ;;  %2757 = vmatpush3.bf16.msra.mxu1 %v2823_v46 }
 0x607   :  { %v1933_v40 = vrot.slane %v1925_v18, %v3044_v53  ;;  %v1940_v17 = vrot.slane %v1926_v20, %v3044_v53  ;;  %v2742_v48 = vpop.f32.mrf.mxu0  ;;  %2758 = vmatprep.subr.bf16.mxu1 %v2903_v15 }
 0x608   :  { %v1860_v19 = vpop.f32.mrf.mxu1  ;;  %v1985_v56 = vrot.slane %v1977_v35, %v3044_v53  ;;  %v1992_v29 = vrot.slane %v1978_v39, %v3044_v53 }
 0x609   :  { %v1941_v4 = vcombine.low %v1917_v25, %v1933_v40  ;;  %v1942_v60 = vcombine.high %v1917_v25, %v1933_v40  ;;  %v1957_v26 = vcombine.low %v1924_v59, %v1940_v17  ;;  %v1958_v43 = vcombine.high %v1924_v59, %v1940_v17  ;;  %v1814_v22 = vpop.f32.mrf.mxu0 }
 0x60a   :  { %v2749_v16 = vpop.f32.mrf.mxu1 }
 0x60b   :  { %v1949_v24 = vrot.slane %v1941_v4, %v3053_v61  ;;  %v1956_v23 = vrot.slane %v1942_v60, %v3053_v61  ;;  %v1965_v28 = vrot.slane %v1957_v26, %v3053_v61  ;;  %v1972_v31 = vrot.slane %v1958_v43, %v3053_v61  ;;  %v2743_v33 = vpop.f32.mrf.mxu0 }
 0x60d   :  { %v2045_v42 = vcombine.low %v1949_v24, %v1956_v23  ;;  %v2579_v44 = vcombine.high %v1949_v24, %v1956_v23  ;;  %v2061_v45 = vcombine.low %v1965_v28, %v1972_v31  ;;  %v2580_v47 = vcombine.high %v1965_v28, %v1972_v31  ;;  %v1903_v49 = vpop.f32.mrf.mxu0 }
 0x60e   :  { %v1993_v27 = vcombine.low %v1719_v7, %v1903_v49  ;;  %v1994_v30 = vcombine.high %v1719_v7, %v1903_v49 }
 0x60f   :  { %v2052_v50 = vrot.slane %v2045_v42, %v3044_v53  ;;  %v2060_v51 = vrot.slane %v2579_v44, %v3044_v53  ;;  %v2068_v52 = vrot.slane %v2061_v45, %v3044_v53  ;;  %v2076_v54 = vrot.slane %v2580_v47, %v3044_v53  ;;  %v2754_v55 = vpop.f32.mrf.mxu0 }
 0x610   :  { %v2001_v32 = vrot.slane %v1993_v27, %v3044_v53  ;;  %v2008_v57 = vrot.slane %v1994_v30, %v3044_v53 }
 0x611   :  { %v1906_v58 = vpop.f32.mrf.mxu0  ;;  %v2077_v0 = vcombine.low %v2052_v50, %v2060_v51  ;;  %v2093_v1 = vcombine.low %v2068_v52, %v2076_v54  ;;  %v2078_v9 = vcombine.high %v2052_v50, %v2060_v51  ;;  %v2094_v41 = vcombine.high %v2068_v52, %v2076_v54 }
 0x612   :  { %v2009_v2 = vcombine.low %v1985_v56, %v2001_v32  ;;  %v2010_v38 = vcombine.high %v1985_v56, %v2001_v32  ;;  %v2025_v3 = vcombine.low %v1992_v29, %v2008_v57  ;;  %v2026_v36 = vcombine.high %v1992_v29, %v2008_v57  ;;  %v2583_v58 = vld [vmem:[%s3524_s3] ss:$0 sm:$0xff] }
 0x613   :  { %v2755_v62 = vpop.f32.mrf.mxu0  ;;  %v2085_v37 = vrot.slane %v2077_v0, %v3053_v61  ;;  %v2101_v63 = vrot.slane %v2093_v1, %v3053_v61  ;;  %v2092_v25 = vrot.slane %v2078_v9, %v3053_v61  ;;  %v2108_v59 = vrot.slane %v2094_v41, %v3053_v61 }
 0x614   :  { %v2017_v34 = vrot.slane %v2009_v2, %v3053_v61  ;;  %v2024_v5 = vrot.slane %v2010_v38, %v3053_v61  ;;  %v2033_v7 = vrot.slane %v2025_v3, %v3053_v61  ;;  %v2040_v8 = vrot.slane %v2026_v36, %v3053_v61  ;;  %v2879_v38 = vld [vmem:[%s3521_s0] sm:$0xff] }
 0x615   :  { %v2109_v12 = vcombine.low %v2085_v37, %v2101_v63  ;;  %v2111_v22 = vcombine.low %v2092_v25, %v2108_v59  ;;  %v2110_v24 = vcombine.high %v2085_v37, %v2101_v63 }
 0x616   :  { %v2113_v10 = vcombine.low %v2017_v34, %v2024_v5  ;;  %v2581_v11 = vcombine.high %v2017_v34, %v2024_v5  ;;  %v2129_v13 = vcombine.low %v2033_v7, %v2040_v8  ;;  %v2582_v14 = vcombine.high %v2033_v7, %v2040_v8  ;;  %v2880_v34 = vld [vmem:[%s3521_s0 + $0x8] sm:$0xff]  ;;  %s2915_s0 = smov [#allocation2]  }
 0x617   :  { %s2535_s3 = sshll.u32 %s2915_s0, 4  ;;  %s2536_s3 = int_to_ptr.vmem [resolvable:$true] %s2535_s3 }
 0x618   :  { %v2120_v21 = vrot.slane %v2113_v10, %v3044_v53  ;;  %v2128_v18 = vrot.slane %v2581_v11, %v3044_v53  ;;  %v2136_v20 = vrot.slane %v2129_v13, %v3044_v53  ;;  %v2144_v6 = vrot.slane %v2582_v14, %v3044_v53  ;;  %v2824_v53 = vld [vmem:[%s3523_s2] sm:$0xff]   ;;  %s2881_s1 = scalar_lea.vmem %s2536_s3, 256  ;;  %p2886_p1 = scmp.lt.s32.totalorder %s2536_s3, %s2536_s3 }
 0x619   :  { %2759 = vmatpush3.bf16.msra.mxu1 %v2824_v53  ;;  %p2882_p0 = scmp.ne.s32.totalorder %s2536_s3, %s2881_s1  ;;  %p2887_p2 = scmp.lt.s32.totalorder %s2881_s1, %s2881_s1 }
 0x61a   :  { %v2146_v40 = vcombine.high %v2120_v21, %v2128_v18  ;;  %v2162_v17 = vcombine.high %v2136_v20, %v2144_v6  ;;  %v2145_v48 = vcombine.low %v2120_v21, %v2128_v18  ;;  %v2161_v19 = vcombine.low %v2136_v20, %v2144_v6  ;;  %2772 = vmatprep.subr.bf16.mxu1 %v2903_v15  ;;  %v2825_v18 = vld [vmem:[%s3529_s8 + $0x8] sm:$0xff]   ;;  %v2826_v20 = vld [vmem:[%s3529_s8] sm:$0xff]  }
 0x61b   :  { %2765 = vmatpush3.bf16.msra.mxu0 %v2825_v18  ;;  %p2888_p3 = por %p2887_p2, %p2886_p1 }
 0x61c   :  { %v2160_v4 = vrot.slane %v2146_v40, %v3053_v61  ;;  %v2176_v60 = vrot.slane %v2162_v17, %v3053_v61  ;;  %v2153_v26 = vrot.slane %v2145_v48, %v3053_v61  ;;  %v2169_v43 = vrot.slane %v2161_v19, %v3053_v61  ;;  %2766 = vmatprep.subr.bf16.mxu0 %v2903_v15 }
 0x61d   :  { %v2112_v61 = vcombine.high %v2092_v25, %v2108_v59  ;;  %p2889_p4 = pnand %p2888_p3, %p2882_p0 }
 0x61e   :  { %v2179_v16 = vcombine.low %v2160_v4, %v2176_v60  ;;  %v2178_v23 = vcombine.high %v2153_v26, %v2169_v43  ;;  %v2177_v28 = vcombine.low %v2153_v26, %v2169_v43  ;;  %v2180_v35 = vcombine.high %v2160_v4, %v2176_v60  ;;  %v2587_v60 = vld [vmem:[%s3527_s6] ss:$0 sm:$0xff] }
 0x61f   :  { %2767 = vmatpush3.bf16.msra.mxu0 %v2826_v20 }
 0x620   :  { %v2811_v31 = vpack.i.bf16 %v2179_v16, %v2111_v22  ;;  %v2806_v33 = vpack.i.bf16 %v2178_v23, %v2110_v24  ;;  %v2816_v39 = vpack.i.bf16 %v2180_v35, %v2112_v61  ;;  %v2588_v22 = vld [vmem:[%s3528_s7] ss:$0 sm:$0xff]  ;;  %v2829_v35 = vld [vmem:[%s3531_s10 + $0x28] sm:$0xff]  }
 0x621   :  { %v2830_v61 = vld [vmem:[%s3531_s10 + $0x20] sm:$0xff]  }
 0x622   :  { %2812 = vrot.lane.b32.xlu1 %v2811_v31, %s2912_s21  ;;  %2807 = vrot.lane.b32.xlu0 %v2806_v33, %s2913_s22  ;;  %v2827_v31 = vld [vmem:[%s3531_s10 + $0x38] sm:$0xff]   ;;  %v2828_v33 = vld [vmem:[%s3531_s10 + $0x30] sm:$0xff]  }
 0x626   :  { %2817 = vrot.lane.b32.xlu1 %v2816_v39, %s2914_s23  ;;  %v2831_v39 = vld [vmem:[%s3531_s10 + $0x18] sm:$0xff]  }
 0x694   :  { %v2813_v42 = vpop.permute.xlu1 %2812  ;;  %v2808_v44 = vpop.permute.xlu0 %2807 }
 0x695   :  { %v2810_v45 = vunpack.i.h.bf16 %v2808_v44  ;;  %v2809_v47 = vunpack.i.l.bf16 %v2808_v44  ;;  %v2815_v49 = vunpack.i.h.bf16 %v2813_v42  ;;  %v2814_v27 = vunpack.i.l.bf16 %v2813_v42  ;;  %v2832_v42 = vld [vmem:[%s3531_s10 + $0x10] sm:$0xff]   ;;  %v2833_v44 = vld [vmem:[%s3531_s10 + $0x8] sm:$0xff]  }
 0x697   :  { %v2205_v30 = vsel %vm1060_vm2, %v2109_v12, %v2809_v47  ;;  %v2206_v50 = vsel %vm1060_vm2, %v2177_v28, %v2810_v45  ;;  %v2834_v45 = vld [vmem:[%s3531_s10] sm:$0xff]  }
 0x698   :  { %v2818_v51 = vpop.permute.xlu1 %2817  ;;  %v2208_v55 = vsel %vm2207_vm5, %v2205_v30, %v2814_v27  ;;  %v2209_v56 = vsel %vm2207_vm5, %v2206_v50, %v2815_v49  ;;  %v2589_v47 = vld [vmem:[%s3530_s9] ss:$0 sm:$0xff] }
 0x699   :  { %v2820_v52 = vunpack.i.h.bf16 %v2818_v51  ;;  %v2819_v54 = vunpack.i.l.bf16 %v2818_v51 }
 0x69b   :  { %v2211_v29 = vsel %vm2210_vm6, %v2208_v55, %v2819_v54  ;;  %v2212_v32 = vsel %vm2210_vm6, %v2209_v56, %v2820_v52 }
 0x69c   :  { %v2213_v57 = vpack.c.bf16 %v2212_v32, %v2211_v29 }
 0x69e   :  { %2761 = vmatmul.mubr.msk.bf16.vlgmr.msra.gmra.mxu1 %vm47_vm0, %v2213_v57 }
 0x69f   :  { %2788 = vmatprep.mubr.msk.bf16.mxu1 %vm2904_vm1, %v2903_v15  ;;  %2773 = vmatpush3.bf16.msra.mxu1 %v2827_v31 }
 0x6a0   :  { %2774 = vmatprep.subr.bf16.mxu1 %v2903_v15 }
 0x6a3   :  { %2775 = vmatpush3.bf16.msra.mxu1 %v2828_v33 }
 0x6a4   :  { %2776 = vmatprep.subr.bf16.mxu1 %v2903_v15 }
 0x6a7   :  { %2777 = vmatpush3.bf16.msra.mxu1 %v2829_v35 }
 0x6a8   :  { %2778 = vmatprep.subr.bf16.mxu1 %v2903_v15 }
 0x6ab   :  { %2779 = vmatpush3.bf16.msra.mxu1 %v2830_v61 }
 0x6ac   :  { %2780 = vmatprep.subr.bf16.mxu1 %v2903_v15 }
 0x6af   :  { %2781 = vmatpush3.bf16.msra.mxu1 %v2831_v39 }
 0x6b0   :  { %2782 = vmatprep.subr.bf16.mxu1 %v2903_v15 }
 0x6b3   :  { %2783 = vmatpush3.bf16.msra.mxu1 %v2832_v42 }
 0x6b4   :  { %2784 = vmatprep.subr.bf16.mxu1 %v2903_v15 }
 0x6b7   :  { %2785 = vmatpush3.bf16.msra.mxu1 %v2833_v44 }
 0x6b8   :  { %2786 = vmatprep.subr.bf16.mxu1 %v2903_v15 }
 0x6bb   :  { %2787 = vmatpush3.bf16.msra.mxu1 %v2834_v45 }
 0x75e   :  { %v2274_v0 = vpop.f32.mrf.mxu1 }
 0x75f   :  { %v2275_v1 = vadd.f32 %v2583_v58, %v2274_v0 }
 0x760   :  { %v2762_v2 = vpop.f32.mrf.mxu1 }
 0x761   :  { %v3447_v3 = vadd.f32 %v2879_v38, %v2275_v1 }
 0x762   :  { %v2277_v36 = vpop.f32.mrf.mxu1 }
 0x763   :  { %v2278_v62 = vadd.f32 %v2583_v58, %v2277_v36  ;;  %v2285_v37 = vsel %vm47_vm0, %v3447_v3, 0.0 }
 0x764   :  { %2286 = vadd.xlane.f32.xlu1 %v2285_v37  ;;  %v2763_v63 = vpop.f32.mrf.mxu1 }
 0x765   :  { %v3454_v5 = vadd.f32 %v2880_v34, %v2278_v62 }
 0x767   :  { %v2288_v7 = vsel %vm47_vm0, %v3454_v5, 0.0 }
 0x768   :  { %2289 = vadd.xlane.f32.xlu0 %v2288_v7 }
 0x7ed   :  { %v2287_v8 = vpop.xlane.xlu1 %2286 }
 0x7ee   :  { %v2291_v9 = vmul.f32 0.03125, %v2287_v8 }
 0x7f0   :  { %v2293_v41 = vsub.f32 %v3447_v3, %v2291_v9  ;;  %v2593_v9 = vld [vmem:[%s3532_s11] ss:$0 sm:$0xff] }
 0x7f1   :  { %v2290_v12 = vpop.xlane.xlu0 %2289 }
 0x7f2   :  { %v2292_v10 = vmul.f32 0.03125, %v2290_v12  ;;  %v2295_v11 = vmul.f32 %v2293_v41, %v2293_v41 }
 0x7f4   :  { %v2294_v13 = vsub.f32 %v3454_v5, %v2292_v10  ;;  %v2297_v14 = vsel %vm47_vm0, %v2295_v11, 0.0 }
 0x7f5   :  { %2298 = vadd.xlane.f32.xlu0 %v2297_v14 }
 0x7f6   :  { %v2296_v46 = vmul.f32 %v2294_v13, %v2294_v13 }
 0x7f8   :  { %v2300_v21 = vsel %vm47_vm0, %v2296_v46, 0.0 }
 0x7f9   :  { %2301 = vadd.xlane.f32.xlu0 %v2300_v21 }
 0x87e   :  { %v2299_v6 = vpop.xlane.xlu0 %2298 }
 0x87f   :  { %v2303_v25 = vmul.f32 0.03125, %v2299_v6 }
 0x881   :  { %v2305_v59 = vadd.f32 1e-05, %v2303_v25 }
 0x882   :  { %v2302_v40 = vpop.xlane.xlu0 %2301 }
 0x883   :  { %2871 = vrsqrt.f32 %v2305_v59  ;;  %v2304_v17 = vmul.f32 0.03125, %v2302_v40 }
 0x885   :  { %v2306_v48 = vadd.f32 1e-05, %v2304_v17 }
 0x887   :  { %2873 = vrsqrt.f32 %v2306_v48 }
 0x890   :  { %v2872_v19 = vpop.eup %2871 }
 0x891   :  { %v2309_v4 = vmul.f32 %v2872_v19, %v2293_v41 }
 0x893   :  { %v2317_v53 = vmul.f32 %v2587_v60, %v2309_v4 }
 0x894   :  { %v2874_v26 = vpop.eup %2873 }
 0x895   :  { %v2310_v43 = vmul.f32 %v2874_v26, %v2294_v13  ;;  %v2325_v24 = vadd.f32 %v2588_v22, %v2317_v53 }
 0x897   :  { %v2318_v16 = vmul.f32 %v2587_v60, %v2310_v43 }
 0x899   :  { %v2326_v23 = vadd.f32 %v2588_v22, %v2318_v16 }
 0x89b   :  { %v2327_v28 = vpack.c.bf16 %v2326_v23, %v2325_v24 }
 0x89d   :  { %2769 = vmatmul.mubr.msk.bf16.vlgmr.msra.gmra.mxu0 %vm47_vm0, %v2327_v28 }
 0x95d   :  { %v2388_v49 = vpop.f32.mrf.mxu0 }
 0x95e   :  { %v2389_v27 = vadd.f32 %v2589_v47, %v2388_v49 }
 0x95f   :  { %v2770_v30 = vpop.f32.mrf.mxu0 }
 0x960   :  { %v2397_v50 = vmul.f32 0.044715, %v2389_v27  ;;  %v2395_v62 = vmul.f32 0.5, %v2389_v27 }
 0x961   :  { %v2391_v51 = vpop.f32.mrf.mxu0 }
 0x962   :  { %v2399_v52 = vmul.f32 %v2397_v50, %v2389_v27  ;;  %v2392_v54 = vadd.f32 %v2589_v47, %v2391_v51 }
 0x963   :  { %v2771_v55 = vpop.f32.mrf.mxu0 }
 0x964   :  { %v2401_v56 = vmul.f32 %v2399_v52, %v2389_v27  ;;  %v2398_v29 = vmul.f32 0.044715, %v2392_v54  ;;  %v2396_v37 = vmul.f32 0.5, %v2392_v54 }
 0x966   :  { %v2403_v32 = vadd.f32 %v2401_v56, %v2389_v27  ;;  %v2400_v57 = vmul.f32 %v2398_v29, %v2392_v54 }
 0x968   :  { %v2405_v58 = vmul.f32 0.7978846, %v2403_v32  ;;  %v2402_v0 = vmul.f32 %v2400_v57, %v2392_v54 }
 0x96a   :  { %2875 = vtanh.f32 %v2405_v58  ;;  %v2404_v15 = vadd.f32 %v2402_v0, %v2392_v54 }
 0x96c   :  { %v2406_v1 = vmul.f32 0.7978846, %v2404_v15 }
 0x96e   :  { %2877 = vtanh.f32 %v2406_v1 }
 0x977   :  { %v2876_v2 = vpop.eup %2875 }
 0x978   :  { %v2409_v38 = vadd.f32 1.0, %v2876_v2 }
 0x97a   :  { %v2411_v34 = vmul.f32 %v2409_v38, %v2395_v62 }
 0x97b   :  { %v2878_v36 = vpop.eup %2877 }
 0x97c   :  { %v2410_v63 = vadd.f32 1.0, %v2878_v36 }
 0x97e   :  { %v2412_v7 = vmul.f32 %v2410_v63, %v2396_v37 }
 0x980   :  { %v2413_v8 = vpack.c.bf16 %v2412_v7, %v2411_v34 }
 0x982   :  { %2789 = vmatmul.mubr.bf16.vlgmr.msra.gmra.mxu1 %v2413_v8 }
 0xa42   :  { %v2519_v41 = vpop.f32.mrf.mxu1 }
 0xa43   :  { %v2520_v12 = vadd.f32 %v2593_v9, %v2519_v41 }
 0xa44   :  { %v2790_v10 = vpop.f32.mrf.mxu1 }
 0xa45   :  { %v2526_v11 = vadd.f32 %v2520_v12, %v3447_v3 }
 0xa46   :  { %v2522_v13 = vpop.f32.mrf.mxu1 }
 0xa47   :  { %2528 = vst.msk [vmem:[#allocation2] sm:$0xff] %vm47_vm0, %v2526_v11  ;;  %v2523_v14 = vadd.f32 %v2593_v9, %v2522_v13 }
 0xa48   :  { %v2791_v46 = vpop.f32.mrf.mxu1 }
 0xa49   :  { %v2527_v21 = vadd.f32 %v2523_v14, %v3454_v5 }
 0xa4b   :  { %2529 = vst.msk [vmem:[#allocation2 + $0x8] sm:$0xff] %vm47_vm0, %v2527_v21 }
 0xa4c   :  { %2892 = shalt.err (!%p2889_p4)
}
 0xa4d   :  { %s2916_s11 = smov 128  }
 0xa4e   :  { %2541 = dma.vmem_to_hbm [thread:$0]  %s2536_s3, 256, %s3533_s12, [#allocation3], %s2916_s11, %s2916_s11, %s2913_s22  }
 0xa4f   :  { %2901 = dma.done.wait [#allocation3], 256  }
 0xa50   :  { %2902 = vsyncadd [#allocation3], 4294967040 }
 0xa51   :  { %2545 = vsyncpa [#allocation3], 1 }

</bundles_post_ra>
